<compile_context>
chip_gen: v7x
topology: tpu7x:2x2x1
jax: 0.10.0
libtpu: 0.0.40
codegen_flags: <defaults>
</compile_context>

<pallas_src>
import numpy as np
import jax
import jax.numpy as jnp
from jax import lax
from jax.experimental import pallas as pl
from jax.experimental.pallas import tpu as pltpu

# ----- static problem dims (small demo shapes consistent with the module) -----
N = 2             # batch
CIN = 5           # conv1 in_channels
H = 2             # electrode axis (conv2 kernel (2,1) -> H2 = 1)
W = 64            # time axis (divisible by 16 for the two (1,4) pools)
K1, P1 = 5, 2     # conv1 kernel / pad along time
K3, P3 = 15, 7    # sep_conv kernel / pad along time
C1, C2 = 16, 32   # channel counts
H2 = H - 1        # height after conv2 (= 1)
W4 = W // 4       # width after pool1
W16 = W // 16     # width after pool2
NW4 = N * H2 * W4     # 32  rows of the fused stage-1 matmul (one per pool-1 group)
NW16 = N * H2 * W16   # 8   rows of the pooled feature map
TAPS1 = 8             # input time taps covered by one pool-1 group's fused window
KF = 128              # fused stage-1 im2col width (2*TAPS1*CIN = 80, zero-padded)

# packed-parameter row offsets (slab is PACK_ROWS x 128)
R_WF = 0                      # fused conv1+conv2 weight, rows 0:128 (80 real)
R_BF = KF                     # 128: fused bias, 128 lanes = (tap j, channel)
R_W3 = R_BF + 8               # 136: sep_conv im2col weight (480 rows, cols 0:32)
R_B3 = R_W3 + K3 * C2         # 616: BN3 bias row (cols 0:32)
PACK_ROWS = R_B3 + 8          # 624 (multiple of 8)


def encoder_kernel(x_ref, pk_ref, feat_ref, idx1_ref, idx2_ref, im2_scr, p2_scr):
    # ---- stage 1: conv1 + BN1 + conv2 + BN2 (+ ReLU) fused into one matmul whose
    #      output lanes are (pool-1 tap j, channel) -> (NW4, 4*C2) = (32, 128).
    wf = pk_ref[R_WF:R_WF + KF, :]                      # (128, 128)
    bf = pk_ref[R_BF:R_BF + 1, :]                       # (1, 128) folded bias
    a = jnp.dot(x_ref[...], wf, preferred_element_type=jnp.float32) + bf
    a = jnp.maximum(a, 0.0)

    # ---- pool1: max over the 4 static lane chunks (no VMEM round-trip) ----
    p0 = a[:, 0 * C2:1 * C2]
    p1 = a[:, 1 * C2:2 * C2]
    p2 = a[:, 2 * C2:3 * C2]
    p3 = a[:, 3 * C2:4 * C2]
    m1 = jnp.maximum(jnp.maximum(p0, p1), jnp.maximum(p2, p3))       # (NW4, C2)
    j1 = jnp.where(p0 == m1, 0,
                   jnp.where(p1 == m1, 1, jnp.where(p2 == m1, 2, 3)))   # first max
    g1 = lax.broadcasted_iota(jnp.int32, (NW4, C2), 0) & (W4 - 1)    # group within batch
    idx1_ref[...] = (4 * g1 + j1).astype(jnp.int32)   # flat index in the (H2=1, W) plane
    # dropout1: identity (eval mode)

    # ---- sep_conv (1x15, pad 7) + BN3 + ReLU: one (32, 480) @ (480, 32) matmul.
    # The im2col slab is written straight from the m1 value; rows that fall outside
    # the sequence keep the zero fill (this IS the conv's zero padding).
    im2_scr[...] = jnp.zeros((NW4, K3 * C2), jnp.float32)
    for n in range(N):
        r0 = n * W4
        for k in range(K3):
            lo = max(0, P3 - k)                 # valid output rows for tap k
            hi = min(W4, W4 + P3 - k)
            im2_scr[r0 + lo:r0 + hi, k * C2:(k + 1) * C2] = (
                m1[r0 + lo + k - P3:r0 + hi + k - P3, :])
    w3 = pk_ref[R_W3:R_W3 + K3 * C2, 0:C2]              # (480, 32), BN3 scale folded
    b3 = pk_ref[R_B3:R_B3 + 1, 0:C2]                    # (1, 32)
    a3 = jnp.maximum(
        jnp.dot(im2_scr[...], w3, preferred_element_type=jnp.float32) + b3, 0.0)  # (32, 32)

    # ---- pool2: one tiny staging store, 4 stride-4 sublane reads, VPU max tree ----
    p2_scr[...] = a3
    q0 = p2_scr[pl.ds(0, NW16, 4), :]
    q1 = p2_scr[pl.ds(1, NW16, 4), :]
    q2 = p2_scr[pl.ds(2, NW16, 4), :]
    q3 = p2_scr[pl.ds(3, NW16, 4), :]
    m2 = jnp.maximum(jnp.maximum(q0, q1), jnp.maximum(q2, q3))       # (NW16, C2)
    j2 = jnp.where(q0 == m2, 0,
                   jnp.where(q1 == m2, 1, jnp.where(q2 == m2, 2, 3)))
    g2 = lax.broadcasted_iota(jnp.int32, (NW16, C2), 0) & (W16 - 1)
    feat_ref[...] = m2
    idx2_ref[...] = (4 * g2 + j2).astype(jnp.int32)   # flat index in the (H2=1, W4) plane
    # dropout2: identity (eval mode)


def encoder_eegnet_forward(x_nchw, pack):
    assert x_nchw.shape == (N, CIN, H, W) and H == 2
    # ---- host-side im2col for the fused conv1+conv2 stage (tiny data, XLA glue) ----
    # Row (n, g) holds the 8-tap x window feeding pool-1 group g: features ordered
    # (electrode e, tap tau, cin), zero-padded from 80 to 128 lanes.
    xp = jnp.pad(x_nchw, ((0, 0), (0, 0), (0, 0), (P1, P1)))       # (N, CIN, H, W+4)
    tpos = 4 * jnp.arange(W4)[None, :] + jnp.arange(TAPS1)[:, None]  # (8, W4) padded idx
    xg = jnp.take(xp, tpos, axis=3)                                # (N, CIN, H, 8, W4)
    xg = jnp.transpose(xg, (0, 4, 2, 3, 1)).reshape(NW4, H * TAPS1 * CIN)   # (32, 80)
    x_im2col = jnp.pad(xg, ((0, 0), (0, KF - H * TAPS1 * CIN)))    # (32, 128)

    out_shapes = (
        jax.ShapeDtypeStruct((NW16, C2), jnp.float32),   # pooled features
        jax.ShapeDtypeStruct((NW4, C2), jnp.int32),      # pool1 indices
        jax.ShapeDtypeStruct((NW16, C2), jnp.int32),     # pool2 indices
    )
    feat_k, idx1_k, idx2_k = pl.pallas_call(
        encoder_kernel,
        out_shape=out_shapes,
        grid_spec=pltpu.PrefetchScalarGridSpec(
            num_scalar_prefetch=0,
            grid=(1,),   # whole batch fused into one step: one matmul, one writeback
            in_specs=[pl.BlockSpec((NW4, KF), lambda i: (0, 0)),
                      pl.BlockSpec((PACK_ROWS, KF), lambda i: (0, 0))],
            out_specs=[pl.BlockSpec((NW16, C2), lambda i: (0, 0)),
                       pl.BlockSpec((NW4, C2), lambda i: (0, 0)),
                       pl.BlockSpec((NW16, C2), lambda i: (0, 0))],
            scratch_shapes=[pltpu.VMEM((NW4, K3 * C2), jnp.float32),   # sep_conv im2col
                            pltpu.VMEM((NW4, C2), jnp.float32)],       # pool2 staging
        ),
        compiler_params=pltpu.CompilerParams(dimension_semantics=("arbitrary",)),
    )(x_im2col, pack)

    # back to PyTorch NCHW layout (free XLA glue; H2 == 1)
    feat = jnp.transpose(feat_k.reshape(N, W16, C2), (0, 2, 1))[:, :, None, :]
    idx1 = jnp.transpose(idx1_k.reshape(N, W4, C2), (0, 2, 1))[:, :, None, :]
    idx2 = jnp.transpose(idx2_k.reshape(N, W16, C2), (0, 2, 1))[:, :, None, :]
    return feat, [idx1, idx2]


def make_params(key):
    ks = jax.random.split(key, 6)
    # PyTorch OIHW weights, deterministic synthetic init
    w1 = 0.2 * jax.random.normal(ks[0], (C1, CIN, 1, K1), jnp.float32)   # conv1
    w2 = 0.3 * jax.random.normal(ks[1], (C2, 1, 2, 1), jnp.float32)      # conv2 (grouped)
    w3 = 0.05 * jax.random.normal(ks[2], (C2, C2, 1, K3), jnp.float32)   # sep_conv

    def bn(k, c):
        kg, kb, km, kv = jax.random.split(k, 4)
        gamma = 1.0 + 0.1 * jax.random.normal(kg, (c,), jnp.float32)
        beta = 0.1 * jax.random.normal(kb, (c,), jnp.float32)
        mean = 0.1 * jax.random.normal(km, (c,), jnp.float32)
        var = jax.random.uniform(kv, (c,), jnp.float32, minval=0.5, maxval=1.5)
        s = gamma * lax.rsqrt(var + 1e-5)
        b = beta - mean * s
        return s, b

    s1, b1 = bn(ks[3], C1)
    s2, b2 = bn(ks[4], C2)
    s3, b3 = bn(ks[5], C2)

    w1n, w2n, w3n = np.asarray(w1), np.asarray(w2), np.asarray(w3)
    s1n, b1n = np.asarray(s1), np.asarray(b1)
    s2n, b2n = np.asarray(s2), np.asarray(b2)
    s3n, b3n = np.asarray(s3), np.asarray(b3)

    # ----- fused conv1*BN1*conv2*BN2-scale weight, lane-dense over the 4 pool-1 taps -----
    # rows: (e, tau, cin); cols: (pool tap j, out channel c2)
    wf = np.zeros((2, TAPS1, CIN, 4, C2), np.float32)
    for c2 in range(C2):
        c1 = c2 // 2
        for e in range(2):
            for j in range(4):
                for k in range(K1):
                    for ci in range(CIN):
                        wf[e, j + k, ci, j, c2] = (w1n[c1, ci, 0, k] * s1n[c1]
                                                   * w2n[c2, 0, e, 0] * s2n[c2])
    wf = wf.reshape(2 * TAPS1 * CIN, 4 * C2)                              # (80, 128)
    bf = (b1n[np.arange(C2) // 2] * (w2n[:, 0, 0, 0] + w2n[:, 0, 1, 0])) * s2n + b2n
    bf4 = np.tile(bf, 4)                                                   # (128,)

    # sep_conv im2col weight (rows ordered (tap, in-channel)) with BN3 scale folded in
    w3s = np.transpose(w3n[:, :, 0, :], (2, 1, 0)).reshape(K3 * C2, C2) * s3n[None, :]

    pack = np.zeros((PACK_ROWS, KF), np.float32)
    pack[R_WF:R_WF + wf.shape[0], :] = wf
    pack[R_BF, :] = bf4
    pack[R_W3:R_W3 + K3 * C2, :C2] = w3s
    pack[R_B3, :C2] = b3n
    assert pack.shape == (PACK_ROWS, KF)
    return (w1, w2, w3), (s1, b1, s2, b2, s3, b3), jnp.asarray(pack)


def _pool_ref(y):
    n_, c_, h_, w_ = y.shape
    win = y.reshape(n_, c_, h_, w_ // 4, 4)
    pooled = win.max(-1)
    j = jnp.argmax(win, axis=-1).astype(jnp.int32)
    base = (4 * jnp.arange(w_ // 4, dtype=jnp.int32)).reshape(1, 1, 1, -1)
    return pooled, base + j


def reference_forward(x, raw_w, bn_params):
    """Plain-JAX reference (NCHW); returns pooled feat, indices and pre-pool maps."""
    w1, w2, w3 = raw_w
    s1, b1, s2, b2, s3, b3 = bn_params
    dn = ('NCHW', 'OIHW', 'NCHW')
    hp = lax.Precision.HIGHEST
    y = lax.conv_general_dilated(x, w1, (1, 1), [(0, 0), (P1, P1)],
                                 dimension_numbers=dn, precision=hp)
    y = y * s1.reshape(1, C1, 1, 1) + b1.reshape(1, C1, 1, 1)
    y = lax.conv_general_dilated(y, w2, (1, 1), [(0, 0), (0, 0)], dimension_numbers=dn,
                                 feature_group_count=C1, precision=hp)
    a2 = jnp.maximum(y * s2.reshape(1, C2, 1, 1) + b2.reshape(1, C2, 1, 1), 0.0)
    m1, i1 = _pool_ref(a2)
    y = lax.conv_general_dilated(m1, w3, (1, 1), [(0, 0), (P3, P3)],
                                 dimension_numbers=dn, precision=hp)
    a3 = jnp.maximum(y * s3.reshape(1, C2, 1, 1) + b3.reshape(1, C2, 1, 1), 0.0)
    feat, i2 = _pool_ref(a3)
    return feat, i1, i2, a2, a3


if __name__ == "__main__":
    key = jax.random.PRNGKey(0)
    kx, kp = jax.random.split(key)
    x = jax.random.normal(kx, (N, CIN, H, W), jnp.float32)   # NCHW like PyTorch
    raw_w, bn_params, pack = make_params(kp)

    feat, (idx1, idx2) = jax.block_until_ready(encoder_eegnet_forward(x, pack))

    assert feat.shape == (N, C2, H2, W16) and feat.dtype == jnp.float32
    assert idx1.shape == (N, C2, H2, W4) and idx1.dtype == jnp.int32
    assert idx2.shape == (N, C2, H2, W16) and idx2.dtype == jnp.int32

    feat_ref, i1_ref, i2_ref, a2_ref, a3_ref = reference_forward(x, raw_w, bn_params)
    err = float(jnp.max(jnp.abs(feat - feat_ref)))
    assert err < 1e-2, f"feat max abs error vs reference: {err}"

    # argmax-index check, masked to windows where the top-2 gap is comfortably above
    # the kernel-vs-reference rounding difference (avoids flaky near-tie mismatches)
    def win_gap(y):
        w = y.reshape(y.shape[0], y.shape[1], y.shape[2], -1, 4)
        s = jnp.sort(w, axis=-1)
        return s[..., -1] - s[..., -2]

    ok1 = jnp.all(jnp.where(win_gap(a2_ref) > 1e-3, idx1 == i1_ref, True))
    ok2 = jnp.all(jnp.where(win_gap(a3_ref) > 1e-3, idx2 == i2_ref, True))
    assert bool(ok1) and bool(ok2), "pool argmax indices disagree with reference"

    print("KERNEL_OK")
</pallas_src>

<mosaic_0001>
module attributes {stable_mosaic.version = 11 : i64} {
  func.func @encoder_kernel(%arg0: i32, %arg1: memref<32x128xf32, #tpu.memory_space<vmem>>, %arg2: memref<624x128xf32, #tpu.memory_space<vmem>>, %arg3: memref<8x32xf32, #tpu.memory_space<vmem>>, %arg4: memref<32x32xi32, #tpu.memory_space<vmem>>, %arg5: memref<8x32xi32, #tpu.memory_space<vmem>>, %arg6: memref<32x480xf32, #tpu.memory_space<vmem>>, %arg7: memref<32x32xf32, #tpu.memory_space<vmem>>) attributes {dimension_semantics = [#tpu.dimension_semantics<arbitrary>], iteration_bounds = array<i64: 1>, scalar_prefetch = 0 : i64, scratch_operands = 2 : i64, tpu.core_type = #tpu.core_type<tc>, window_params = [{pipeline_mode = #tpu.pipeline_mode<synchronous>, transform_indices = @transform_0, window_bounds = array<i64: 32, 128>}, {pipeline_mode = #tpu.pipeline_mode<synchronous>, transform_indices = @transform_1, window_bounds = array<i64: 624, 128>}, {pipeline_mode = #tpu.pipeline_mode<synchronous>, transform_indices = @transform_2, window_bounds = array<i64: 8, 32>}, {pipeline_mode = #tpu.pipeline_mode<synchronous>, transform_indices = @transform_3, window_bounds = array<i64: 32, 32>}, {pipeline_mode = #tpu.pipeline_mode<synchronous>, transform_indices = @transform_4, window_bounds = array<i64: 8, 32>}]} {
    %c0 = arith.constant 0 : index
    %c0_0 = arith.constant 0 : index
    %0 = vector.load %arg2[%c0, %c0_0] : memref<624x128xf32, #tpu.memory_space<vmem>>, vector<128x128xf32>
    %c128 = arith.constant 128 : index
    %c0_1 = arith.constant 0 : index
    %1 = vector.load %arg2[%c128, %c0_1] : memref<624x128xf32, #tpu.memory_space<vmem>>, vector<1x128xf32>
    %c0_2 = arith.constant 0 : index
    %c0_3 = arith.constant 0 : index
    %2 = vector.load %arg1[%c0_2, %c0_3] : memref<32x128xf32, #tpu.memory_space<vmem>>, vector<32x128xf32>
    %cst = arith.constant dense<0.000000e+00> : vector<32x128xf32>
    %3 = tpu.matmul %2, %0, %cst {dimension_numbers = #tpu.dot_dimension_numbers<[1], [0], [0], [1], [0, 0, 1, 1], [], []>} : vector<32x128xf32>, vector<128x128xf32>, vector<32x128xf32> -> vector<32x128xf32>
    %4 = vector.broadcast %1 : vector<1x128xf32> to vector<32x128xf32>
    %5 = arith.addf %3, %4 : vector<32x128xf32>
    %cst_4 = arith.constant 0.000000e+00 : f32
    %6 = vector.broadcast %cst_4 : f32 to vector<32x128xf32>
    %7 = arith.maximumf %5, %6 : vector<32x128xf32>
    %8 = vector.extract_strided_slice %7 {offsets = [0, 0], sizes = [32, 32], strides = [1, 1]} : vector<32x128xf32> to vector<32x32xf32>
    %9 = vector.extract_strided_slice %7 {offsets = [0, 32], sizes = [32, 32], strides = [1, 1]} : vector<32x128xf32> to vector<32x32xf32>
    %10 = vector.extract_strided_slice %7 {offsets = [0, 64], sizes = [32, 32], strides = [1, 1]} : vector<32x128xf32> to vector<32x32xf32>
    %11 = vector.extract_strided_slice %7 {offsets = [0, 96], sizes = [32, 32], strides = [1, 1]} : vector<32x128xf32> to vector<32x32xf32>
    %12 = arith.maximumf %8, %9 : vector<32x32xf32>
    %13 = arith.maximumf %10, %11 : vector<32x32xf32>
    %14 = arith.maximumf %12, %13 : vector<32x32xf32>
    %15 = arith.cmpf oeq, %8, %14 : vector<32x32xf32>
    %16 = arith.cmpf oeq, %9, %14 : vector<32x32xf32>
    %17 = arith.cmpf oeq, %10, %14 : vector<32x32xf32>
    %c2_i32 = arith.constant 2 : i32
    %c3_i32 = arith.constant 3 : i32
    %18 = vector.broadcast %c2_i32 : i32 to vector<32x32xi32>
    %19 = vector.broadcast %c3_i32 : i32 to vector<32x32xi32>
    %20 = arith.select %17, %18, %19 : vector<32x32xi1>, vector<32x32xi32>
    %c1_i32 = arith.constant 1 : i32
    %21 = vector.broadcast %c1_i32 : i32 to vector<32x32xi32>
    %22 = arith.select %16, %21, %20 : vector<32x32xi1>, vector<32x32xi32>
    %c0_i32 = arith.constant 0 : i32
    %23 = vector.broadcast %c0_i32 : i32 to vector<32x32xi32>
    %24 = arith.select %15, %23, %22 : vector<32x32xi1>, vector<32x32xi32>
    %25 = tpu.iota {dimensions = array<i32: 0>} : vector<32x32xi32>
    %c15_i32 = arith.constant 15 : i32
    %26 = vector.broadcast %c15_i32 : i32 to vector<32x32xi32>
    %27 = arith.andi %25, %26 : vector<32x32xi32>
    %c4_i32 = arith.constant 4 : i32
    %28 = vector.broadcast %c4_i32 : i32 to vector<32x32xi32>
    %29 = arith.muli %28, %27 : vector<32x32xi32>
    %30 = arith.addi %29, %24 : vector<32x32xi32>
    %c0_5 = arith.constant 0 : index
    %c0_6 = arith.constant 0 : index
    %31 = vector.load %arg4[%c0_5, %c0_6] : memref<32x32xi32, #tpu.memory_space<vmem>>, vector<32x32xi32>
    tpu.vector_store %arg4[%c0_5, %c0_6], %30 {strides = array<i32>} : memref<32x32xi32, #tpu.memory_space<vmem>>, vector<32x32xi32>,
    %cst_7 = arith.constant 0.000000e+00 : f32
    %32 = vector.broadcast %cst_7 : f32 to vector<32x480xf32>
    %c0_8 = arith.constant 0 : index
    %c0_9 = arith.constant 0 : index
    %33 = vector.load %arg6[%c0_8, %c0_9] : memref<32x480xf32, #tpu.memory_space<vmem>>, vector<32x480xf32>
    tpu.vector_store %arg6[%c0_8, %c0_9], %32 {strides = array<i32>} : memref<32x480xf32, #tpu.memory_space<vmem>>, vector<32x480xf32>,
    %34 = vector.extract_strided_slice %14 {offsets = [0, 0], sizes = [9, 32], strides = [1, 1]} : vector<32x32xf32> to vector<9x32xf32>
    %c7 = arith.constant 7 : index
    %c0_10 = arith.constant 0 : index
    %35 = vector.load %arg6[%c7, %c0_10] : memref<32x480xf32, #tpu.memory_space<vmem>>, vector<9x32xf32>
    tpu.vector_store %arg6[%c7, %c0_10], %34 {strides = array<i32>} : memref<32x480xf32, #tpu.memory_space<vmem>>, vector<9x32xf32>,
    %36 = vector.extract_strided_slice %14 {offsets = [0, 0], sizes = [10, 32], strides = [1, 1]} : vector<32x32xf32> to vector<10x32xf32>
    %c6 = arith.constant 6 : index
    %c32 = arith.constant 32 : index
    %37 = vector.load %arg6[%c6, %c32] : memref<32x480xf32, #tpu.memory_space<vmem>>, vector<10x32xf32>
    tpu.vector_store %arg6[%c6, %c32], %36 {strides = array<i32>} : memref<32x480xf32, #tpu.memory_space<vmem>>, vector<10x32xf32>,
    %38 = vector.extract_strided_slice %14 {offsets = [0, 0], sizes = [11, 32], strides = [1, 1]} : vector<32x32xf32> to vector<11x32xf32>
    %c5 = arith.constant 5 : index
    %c64 = arith.constant 64 : index
    %39 = vector.load %arg6[%c5, %c64] : memref<32x480xf32, #tpu.memory_space<vmem>>, vector<11x32xf32>
    tpu.vector_store %arg6[%c5, %c64], %38 {strides = array<i32>} : memref<32x480xf32, #tpu.memory_space<vmem>>, vector<11x32xf32>,
    %40 = vector.extract_strided_slice %14 {offsets = [0, 0], sizes = [12, 32], strides = [1, 1]} : vector<32x32xf32> to vector<12x32xf32>
    %c4 = arith.constant 4 : index
    %c96 = arith.constant 96 : index
    %41 = vector.load %arg6[%c4, %c96] : memref<32x480xf32, #tpu.memory_space<vmem>>, vector<12x32xf32>
    tpu.vector_store %arg6[%c4, %c96], %40 {strides = array<i32>} : memref<32x480xf32, #tpu.memory_space<vmem>>, vector<12x32xf32>,
    %42 = vector.extract_strided_slice %14 {offsets = [0, 0], sizes = [13, 32], strides = [1, 1]} : vector<32x32xf32> to vector<13x32xf32>
    %c3 = arith.constant 3 : index
    %c128_11 = arith.constant 128 : index
    %43 = vector.load %arg6[%c3, %c128_11] : memref<32x480xf32, #tpu.memory_space<vmem>>, vector<13x32xf32>
    tpu.vector_store %arg6[%c3, %c128_11], %42 {strides = array<i32>} : memref<32x480xf32, #tpu.memory_space<vmem>>, vector<13x32xf32>,
    %44 = vector.extract_strided_slice %14 {offsets = [0, 0], sizes = [14, 32], strides = [1, 1]} : vector<32x32xf32> to vector<14x32xf32>
    %c2 = arith.constant 2 : index
    %c160 = arith.constant 160 : index
    %45 = vector.load %arg6[%c2, %c160] : memref<32x480xf32, #tpu.memory_space<vmem>>, vector<14x32xf32>
    tpu.vector_store %arg6[%c2, %c160], %44 {strides = array<i32>} : memref<32x480xf32, #tpu.memory_space<vmem>>, vector<14x32xf32>,
    %46 = vector.extract_strided_slice %14 {offsets = [0, 0], sizes = [15, 32], strides = [1, 1]} : vector<32x32xf32> to vector<15x32xf32>
    %c1 = arith.constant 1 : index
    %c192 = arith.constant 192 : index
    %47 = vector.load %arg6[%c1, %c192] : memref<32x480xf32, #tpu.memory_space<vmem>>, vector<15x32xf32>
    tpu.vector_store %arg6[%c1, %c192], %46 {strides = array<i32>} : memref<32x480xf32, #tpu.memory_space<vmem>>, vector<15x32xf32>,
    %48 = vector.extract_strided_slice %14 {offsets = [0, 0], sizes = [16, 32], strides = [1, 1]} : vector<32x32xf32> to vector<16x32xf32>
    %c0_12 = arith.constant 0 : index
    %c224 = arith.constant 224 : index
    %49 = vector.load %arg6[%c0_12, %c224] : memref<32x480xf32, #tpu.memory_space<vmem>>, vector<16x32xf32>
    tpu.vector_store %arg6[%c0_12, %c224], %48 {strides = array<i32>} : memref<32x480xf32, #tpu.memory_space<vmem>>, vector<16x32xf32>,
    %50 = vector.extract_strided_slice %14 {offsets = [1, 0], sizes = [15, 32], strides = [1, 1]} : vector<32x32xf32> to vector<15x32xf32>
    %c0_13 = arith.constant 0 : index
    %c256 = arith.constant 256 : index
    %51 = vector.load %arg6[%c0_13, %c256] : memref<32x480xf32, #tpu.memory_space<vmem>>, vector<15x32xf32>
    tpu.vector_store %arg6[%c0_13, %c256], %50 {strides = array<i32>} : memref<32x480xf32, #tpu.memory_space<vmem>>, vector<15x32xf32>,
    %52 = vector.extract_strided_slice %14 {offsets = [2, 0], sizes = [14, 32], strides = [1, 1]} : vector<32x32xf32> to vector<14x32xf32>
    %c0_14 = arith.constant 0 : index
    %c288 = arith.constant 288 : index
    %53 = vector.load %arg6[%c0_14, %c288] : memref<32x480xf32, #tpu.memory_space<vmem>>, vector<14x32xf32>
    tpu.vector_store %arg6[%c0_14, %c288], %52 {strides = array<i32>} : memref<32x480xf32, #tpu.memory_space<vmem>>, vector<14x32xf32>,
    %54 = vector.extract_strided_slice %14 {offsets = [3, 0], sizes = [13, 32], strides = [1, 1]} : vector<32x32xf32> to vector<13x32xf32>
    %c0_15 = arith.constant 0 : index
    %c320 = arith.constant 320 : index
    %55 = vector.load %arg6[%c0_15, %c320] : memref<32x480xf32, #tpu.memory_space<vmem>>, vector<13x32xf32>
    tpu.vector_store %arg6[%c0_15, %c320], %54 {strides = array<i32>} : memref<32x480xf32, #tpu.memory_space<vmem>>, vector<13x32xf32>,
    %56 = vector.extract_strided_slice %14 {offsets = [4, 0], sizes = [12, 32], strides = [1, 1]} : vector<32x32xf32> to vector<12x32xf32>
    %c0_16 = arith.constant 0 : index
    %c352 = arith.constant 352 : index
    %57 = vector.load %arg6[%c0_16, %c352] : memref<32x480xf32, #tpu.memory_space<vmem>>, vector<12x32xf32>
    tpu.vector_store %arg6[%c0_16, %c352], %56 {strides = array<i32>} : memref<32x480xf32, #tpu.memory_space<vmem>>, vector<12x32xf32>,
    %58 = vector.extract_strided_slice %14 {offsets = [5, 0], sizes = [11, 32], strides = [1, 1]} : vector<32x32xf32> to vector<11x32xf32>
    %c0_17 = arith.constant 0 : index
    %c384 = arith.constant 384 : index
    %59 = vector.load %arg6[%c0_17, %c384] : memref<32x480xf32, #tpu.memory_space<vmem>>, vector<11x32xf32>
    tpu.vector_store %arg6[%c0_17, %c384], %58 {strides = array<i32>} : memref<32x480xf32, #tpu.memory_space<vmem>>, vector<11x32xf32>,
    %60 = vector.extract_strided_slice %14 {offsets = [6, 0], sizes = [10, 32], strides = [1, 1]} : vector<32x32xf32> to vector<10x32xf32>
    %c0_18 = arith.constant 0 : index
    %c416 = arith.constant 416 : index
    %61 = vector.load %arg6[%c0_18, %c416] : memref<32x480xf32, #tpu.memory_space<vmem>>, vector<10x32xf32>
    tpu.vector_store %arg6[%c0_18, %c416], %60 {strides = array<i32>} : memref<32x480xf32, #tpu.memory_space<vmem>>, vector<10x32xf32>,
    %62 = vector.extract_strided_slice %14 {offsets = [7, 0], sizes = [9, 32], strides = [1, 1]} : vector<32x32xf32> to vector<9x32xf32>
    %c0_19 = arith.constant 0 : index
    %c448 = arith.constant 448 : index
    %63 = vector.load %arg6[%c0_19, %c448] : memref<32x480xf32, #tpu.memory_space<vmem>>, vector<9x32xf32>
    tpu.vector_store %arg6[%c0_19, %c448], %62 {strides = array<i32>} : memref<32x480xf32, #tpu.memory_space<vmem>>, vector<9x32xf32>,
    %64 = vector.extract_strided_slice %14 {offsets = [16, 0], sizes = [9, 32], strides = [1, 1]} : vector<32x32xf32> to vector<9x32xf32>
    %c23 = arith.constant 23 : index
    %c0_20 = arith.constant 0 : index
    %65 = vector.load %arg6[%c23, %c0_20] : memref<32x480xf32, #tpu.memory_space<vmem>>, vector<9x32xf32>
    tpu.vector_store %arg6[%c23, %c0_20], %64 {strides = array<i32>} : memref<32x480xf32, #tpu.memory_space<vmem>>, vector<9x32xf32>,
    %66 = vector.extract_strided_slice %14 {offsets = [16, 0], sizes = [10, 32], strides = [1, 1]} : vector<32x32xf32> to vector<10x32xf32>
    %c22 = arith.constant 22 : index
    %c32_21 = arith.constant 32 : index
    %67 = vector.load %arg6[%c22, %c32_21] : memref<32x480xf32, #tpu.memory_space<vmem>>, vector<10x32xf32>
    tpu.vector_store %arg6[%c22, %c32_21], %66 {strides = array<i32>} : memref<32x480xf32, #tpu.memory_space<vmem>>, vector<10x32xf32>,
    %68 = vector.extract_strided_slice %14 {offsets = [16, 0], sizes = [11, 32], strides = [1, 1]} : vector<32x32xf32> to vector<11x32xf32>
    %c21 = arith.constant 21 : index
    %c64_22 = arith.constant 64 : index
    %69 = vector.load %arg6[%c21, %c64_22] : memref<32x480xf32, #tpu.memory_space<vmem>>, vector<11x32xf32>
    tpu.vector_store %arg6[%c21, %c64_22], %68 {strides = array<i32>} : memref<32x480xf32, #tpu.memory_space<vmem>>, vector<11x32xf32>,
    %70 = vector.extract_strided_slice %14 {offsets = [16, 0], sizes = [12, 32], strides = [1, 1]} : vector<32x32xf32> to vector<12x32xf32>
    %c20 = arith.constant 20 : index
    %c96_23 = arith.constant 96 : index
    %71 = vector.load %arg6[%c20, %c96_23] : memref<32x480xf32, #tpu.memory_space<vmem>>, vector<12x32xf32>
    tpu.vector_store %arg6[%c20, %c96_23], %70 {strides = array<i32>} : memref<32x480xf32, #tpu.memory_space<vmem>>, vector<12x32xf32>,
    %72 = vector.extract_strided_slice %14 {offsets = [16, 0], sizes = [13, 32], strides = [1, 1]} : vector<32x32xf32> to vector<13x32xf32>
    %c19 = arith.constant 19 : index
    %c128_24 = arith.constant 128 : index
    %73 = vector.load %arg6[%c19, %c128_24] : memref<32x480xf32, #tpu.memory_space<vmem>>, vector<13x32xf32>
    tpu.vector_store %arg6[%c19, %c128_24], %72 {strides = array<i32>} : memref<32x480xf32, #tpu.memory_space<vmem>>, vector<13x32xf32>,
    %74 = vector.extract_strided_slice %14 {offsets = [16, 0], sizes = [14, 32], strides = [1, 1]} : vector<32x32xf32> to vector<14x32xf32>
    %c18 = arith.constant 18 : index
    %c160_25 = arith.constant 160 : index
    %75 = vector.load %arg6[%c18, %c160_25] : memref<32x480xf32, #tpu.memory_space<vmem>>, vector<14x32xf32>
    tpu.vector_store %arg6[%c18, %c160_25], %74 {strides = array<i32>} : memref<32x480xf32, #tpu.memory_space<vmem>>, vector<14x32xf32>,
    %76 = vector.extract_strided_slice %14 {offsets = [16, 0], sizes = [15, 32], strides = [1, 1]} : vector<32x32xf32> to vector<15x32xf32>
    %c17 = arith.constant 17 : index
    %c192_26 = arith.constant 192 : index
    %77 = vector.load %arg6[%c17, %c192_26] : memref<32x480xf32, #tpu.memory_space<vmem>>, vector<15x32xf32>
    tpu.vector_store %arg6[%c17, %c192_26], %76 {strides = array<i32>} : memref<32x480xf32, #tpu.memory_space<vmem>>, vector<15x32xf32>,
    %78 = vector.extract_strided_slice %14 {offsets = [16, 0], sizes = [16, 32], strides = [1, 1]} : vector<32x32xf32> to vector<16x32xf32>
    %c16 = arith.constant 16 : index
    %c224_27 = arith.constant 224 : index
    %79 = vector.load %arg6[%c16, %c224_27] : memref<32x480xf32, #tpu.memory_space<vmem>>, vector<16x32xf32>
    tpu.vector_store %arg6[%c16, %c224_27], %78 {strides = array<i32>} : memref<32x480xf32, #tpu.memory_space<vmem>>, vector<16x32xf32>,
    %80 = vector.extract_strided_slice %14 {offsets = [17, 0], sizes = [15, 32], strides = [1, 1]} : vector<32x32xf32> to vector<15x32xf32>
    %c16_28 = arith.constant 16 : index
    %c256_29 = arith.constant 256 : index
    %81 = vector.load %arg6[%c16_28, %c256_29] : memref<32x480xf32, #tpu.memory_space<vmem>>, vector<15x32xf32>
    tpu.vector_store %arg6[%c16_28, %c256_29], %80 {strides = array<i32>} : memref<32x480xf32, #tpu.memory_space<vmem>>, vector<15x32xf32>,
    %82 = vector.extract_strided_slice %14 {offsets = [18, 0], sizes = [14, 32], strides = [1, 1]} : vector<32x32xf32> to vector<14x32xf32>
    %c16_30 = arith.constant 16 : index
    %c288_31 = arith.constant 288 : index
    %83 = vector.load %arg6[%c16_30, %c288_31] : memref<32x480xf32, #tpu.memory_space<vmem>>, vector<14x32xf32>
    tpu.vector_store %arg6[%c16_30, %c288_31], %82 {strides = array<i32>} : memref<32x480xf32, #tpu.memory_space<vmem>>, vector<14x32xf32>,
    %84 = vector.extract_strided_slice %14 {offsets = [19, 0], sizes = [13, 32], strides = [1, 1]} : vector<32x32xf32> to vector<13x32xf32>
    %c16_32 = arith.constant 16 : index
    %c320_33 = arith.constant 320 : index
    %85 = vector.load %arg6[%c16_32, %c320_33] : memref<32x480xf32, #tpu.memory_space<vmem>>, vector<13x32xf32>
    tpu.vector_store %arg6[%c16_32, %c320_33], %84 {strides = array<i32>} : memref<32x480xf32, #tpu.memory_space<vmem>>, vector<13x32xf32>,
    %86 = vector.extract_strided_slice %14 {offsets = [20, 0], sizes = [12, 32], strides = [1, 1]} : vector<32x32xf32> to vector<12x32xf32>
    %c16_34 = arith.constant 16 : index
    %c352_35 = arith.constant 352 : index
    %87 = vector.load %arg6[%c16_34, %c352_35] : memref<32x480xf32, #tpu.memory_space<vmem>>, vector<12x32xf32>
    tpu.vector_store %arg6[%c16_34, %c352_35], %86 {strides = array<i32>} : memref<32x480xf32, #tpu.memory_space<vmem>>, vector<12x32xf32>,
    %88 = vector.extract_strided_slice %14 {offsets = [21, 0], sizes = [11, 32], strides = [1, 1]} : vector<32x32xf32> to vector<11x32xf32>
    %c16_36 = arith.constant 16 : index
    %c384_37 = arith.constant 384 : index
    %89 = vector.load %arg6[%c16_36, %c384_37] : memref<32x480xf32, #tpu.memory_space<vmem>>, vector<11x32xf32>
    tpu.vector_store %arg6[%c16_36, %c384_37], %88 {strides = array<i32>} : memref<32x480xf32, #tpu.memory_space<vmem>>, vector<11x32xf32>,
    %90 = vector.extract_strided_slice %14 {offsets = [22, 0], sizes = [10, 32], strides = [1, 1]} : vector<32x32xf32> to vector<10x32xf32>
    %c16_38 = arith.constant 16 : index
    %c416_39 = arith.constant 416 : index
    %91 = vector.load %arg6[%c16_38, %c416_39] : memref<32x480xf32, #tpu.memory_space<vmem>>, vector<10x32xf32>
    tpu.vector_store %arg6[%c16_38, %c416_39], %90 {strides = array<i32>} : memref<32x480xf32, #tpu.memory_space<vmem>>, vector<10x32xf32>,
    %92 = vector.extract_strided_slice %14 {offsets = [23, 0], sizes = [9, 32], strides = [1, 1]} : vector<32x32xf32> to vector<9x32xf32>
    %c16_40 = arith.constant 16 : index
    %c448_41 = arith.constant 448 : index
    %93 = vector.load %arg6[%c16_40, %c448_41] : memref<32x480xf32, #tpu.memory_space<vmem>>, vector<9x32xf32>
    tpu.vector_store %arg6[%c16_40, %c448_41], %92 {strides = array<i32>} : memref<32x480xf32, #tpu.memory_space<vmem>>, vector<9x32xf32>,
    %c136 = arith.constant 136 : index
    %c0_42 = arith.constant 0 : index
    %94 = vector.load %arg2[%c136, %c0_42] : memref<624x128xf32, #tpu.memory_space<vmem>>, vector<480x32xf32>
    %c616 = arith.constant 616 : index
    %c0_43 = arith.constant 0 : index
    %95 = vector.load %arg2[%c616, %c0_43] : memref<624x128xf32, #tpu.memory_space<vmem>>, vector<1x32xf32>
    %c0_44 = arith.constant 0 : index
    %c0_45 = arith.constant 0 : index
    %96 = vector.load %arg6[%c0_44, %c0_45] : memref<32x480xf32, #tpu.memory_space<vmem>>, vector<32x480xf32>
    %cst_46 = arith.constant dense<0.000000e+00> : vector<32x32xf32>
    %97 = tpu.matmul %96, %94, %cst_46 {dimension_numbers = #tpu.dot_dimension_numbers<[1], [0], [0], [1], [0, 0, 1, 1], [], []>} : vector<32x480xf32>, vector<480x32xf32>, vector<32x32xf32> -> vector<32x32xf32>
    %98 = vector.broadcast %95 : vector<1x32xf32> to vector<32x32xf32>
    %99 = arith.addf %97, %98 : vector<32x32xf32>
    %cst_47 = arith.constant 0.000000e+00 : f32
    %100 = vector.broadcast %cst_47 : f32 to vector<32x32xf32>
    %101 = arith.maximumf %99, %100 : vector<32x32xf32>
    %c0_48 = arith.constant 0 : index
    %c0_49 = arith.constant 0 : index
    %102 = vector.load %arg7[%c0_48, %c0_49] : memref<32x32xf32, #tpu.memory_space<vmem>>, vector<32x32xf32>
    tpu.vector_store %arg7[%c0_48, %c0_49], %101 {strides = array<i32>} : memref<32x32xf32, #tpu.memory_space<vmem>>, vector<32x32xf32>,
    %c0_50 = arith.constant 0 : index
    %c0_51 = arith.constant 0 : index
    %103 = tpu.strided_load %arg7[%c0_50, %c0_51] {strides = array<i32: 4, 1>} : memref<32x32xf32, #tpu.memory_space<vmem>>, vector<8x32xf32>
    %c1_52 = arith.constant 1 : index
    %c0_53 = arith.constant 0 : index
    %104 = tpu.strided_load %arg7[%c1_52, %c0_53] {strides = array<i32: 4, 1>} : memref<32x32xf32, #tpu.memory_space<vmem>>, vector<8x32xf32>
    %c2_54 = arith.constant 2 : index
    %c0_55 = arith.constant 0 : index
    %105 = tpu.strided_load %arg7[%c2_54, %c0_55] {strides = array<i32: 4, 1>} : memref<32x32xf32, #tpu.memory_space<vmem>>, vector<8x32xf32>
    %c3_56 = arith.constant 3 : index
    %c0_57 = arith.constant 0 : index
    %106 = tpu.strided_load %arg7[%c3_56, %c0_57] {strides = array<i32: 4, 1>} : memref<32x32xf32, #tpu.memory_space<vmem>>, vector<8x32xf32>
    %107 = arith.maximumf %103, %104 : vector<8x32xf32>
    %108 = arith.maximumf %105, %106 : vector<8x32xf32>
    %109 = arith.maximumf %107, %108 : vector<8x32xf32>
    %110 = arith.cmpf oeq, %103, %109 : vector<8x32xf32>
    %111 = arith.cmpf oeq, %104, %109 : vector<8x32xf32>
    %112 = arith.cmpf oeq, %105, %109 : vector<8x32xf32>
    %c2_i32_58 = arith.constant 2 : i32
    %c3_i32_59 = arith.constant 3 : i32
    %113 = vector.broadcast %c2_i32_58 : i32 to vector<8x32xi32>
    %114 = vector.broadcast %c3_i32_59 : i32 to vector<8x32xi32>
    %115 = arith.select %112, %113, %114 : vector<8x32xi1>, vector<8x32xi32>
    %c1_i32_60 = arith.constant 1 : i32
    %116 = vector.broadcast %c1_i32_60 : i32 to vector<8x32xi32>
    %117 = arith.select %111, %116, %115 : vector<8x32xi1>, vector<8x32xi32>
    %c0_i32_61 = arith.constant 0 : i32
    %118 = vector.broadcast %c0_i32_61 : i32 to vector<8x32xi32>
    %119 = arith.select %110, %118, %117 : vector<8x32xi1>, vector<8x32xi32>
    %120 = tpu.iota {dimensions = array<i32: 0>} : vector<8x32xi32>
    %c3_i32_62 = arith.constant 3 : i32
    %121 = vector.broadcast %c3_i32_62 : i32 to vector<8x32xi32>
    %122 = arith.andi %120, %121 : vector<8x32xi32>
    %c0_63 = arith.constant 0 : index
    %c0_64 = arith.constant 0 : index
    %123 = vector.load %arg3[%c0_63, %c0_64] : memref<8x32xf32, #tpu.memory_space<vmem>>, vector<8x32xf32>
    tpu.vector_store %arg3[%c0_63, %c0_64], %109 {strides = array<i32>} : memref<8x32xf32, #tpu.memory_space<vmem>>, vector<8x32xf32>,
    %c4_i32_65 = arith.constant 4 : i32
    %124 = vector.broadcast %c4_i32_65 : i32 to vector<8x32xi32>
    %125 = arith.muli %124, %122 : vector<8x32xi32>
    %126 = arith.addi %125, %119 : vector<8x32xi32>
    %c0_66 = arith.constant 0 : index
    %c0_67 = arith.constant 0 : index
    %127 = vector.load %arg5[%c0_66, %c0_67] : memref<8x32xi32, #tpu.memory_space<vmem>>, vector<8x32xi32>
    tpu.vector_store %arg5[%c0_66, %c0_67], %126 {strides = array<i32>} : memref<8x32xi32, #tpu.memory_space<vmem>>, vector<8x32xi32>,
    return
  }
  func.func @transform_0(%arg0: i32) -> (i32, i32) {
    %c0_i32 = arith.constant 0 : i32
    %c0_i32_0 = arith.constant 0 : i32
    %c0_i32_1 = arith.constant 0 : i32
    return %c0_i32, %c0_i32_0 : i32, i32
  }
  func.func @transform_1(%arg0: i32) -> (i32, i32) {
    %c0_i32 = arith.constant 0 : i32
    %c0_i32_0 = arith.constant 0 : i32
    %c0_i32_1 = arith.constant 0 : i32
    return %c0_i32, %c0_i32_0 : i32, i32
  }
  func.func @transform_2(%arg0: i32) -> (i32, i32) {
    %c0_i32 = arith.constant 0 : i32
    %c0_i32_0 = arith.constant 0 : i32
    %c0_i32_1 = arith.constant 0 : i32
    return %c0_i32, %c0_i32_0 : i32, i32
  }
  func.func @transform_3(%arg0: i32) -> (i32, i32) {
    %c0_i32 = arith.constant 0 : i32
    %c0_i32_0 = arith.constant 0 : i32
    %c0_i32_1 = arith.constant 0 : i32
    return %c0_i32, %c0_i32_0 : i32, i32
  }
  func.func @transform_4(%arg0: i32) -> (i32, i32) {
    %c0_i32 = arith.constant 0 : i32
    %c0_i32_0 = arith.constant 0 : i32
    %c0_i32_1 = arith.constant 0 : i32
    return %c0_i32, %c0_i32_0 : i32, i32
  }
}

</mosaic_0001>

<bundles_post_ra>
// kernel: tpu_custom_call.1
= control target key start
LH: loop header
LB: loop body
LE: loop exit
PB: predicated region body
PF: predicated region fallthrough
CT: control target
= control target key end

     0   :  { %10 = vsyncpa [#allocation5], 0  ;;  %s1624_s0 = inlined_call_operand.hbm [shape: f32[32,128], index: 0, kind: input, shape index: {}]   ;;  %s1625_s1 = inlined_call_operand.hbm [shape: f32[624,128], index: 1, kind: input, shape index: {}]   ;;  %s1626_s2 = inlined_call_operand.hbm [shape: f32[8,32], index: 2, kind: output, shape index: {0}]   ;;  %s1627_s3 = inlined_call_operand.hbm [shape: s32[32,32], index: 3, kind: output, shape index: {1}]   ;;  %s1628_s4 = inlined_call_operand.hbm [shape: s32[8,32], index: 4, kind: output, shape index: {2}]  }
   0x1   :  { %11 = vsyncpa [#allocation8], 0 }
   0x2   :  { %12 = vsyncpa [#allocation6], 0 }
   0x3   :  { %13 = vsyncpa [#allocation11], 0  ;;  %s1227_s15 = smov [#allocation4]   ;;  %s1109_s19 = scalar_lea.hbm %s1624_s0, 512 }
   0x4   :  { %s19_s16 = sshll.u32 %s1227_s15, 4  ;;  %p1110_p0 = scmp.ne.s32.totalorder %s1624_s0, %s1109_s19  ;;  %s20_s16 = int_to_ptr.vmem [resolvable:$true] %s19_s16 }
   0x5   :  { %p1113_p1 = scmp.lt.u32.totalorder %s1109_s19, %s1624_s0 }
   0x7   :  { %p1115_p2 = pnand %p1113_p1, %p1110_p0 }
   0x9   :  { %1118 = shalt.err (!%p1115_p2)
}
   0xa   :  { %s1119_s24 = scalar_lea.vmem %s20_s16, 512  ;;  %p1124_p4 = scmp.lt.s32.totalorder %s20_s16, %s20_s16 }
   0xb   :  { %p1120_p3 = scmp.ne.s32.totalorder %s20_s16, %s1119_s24  ;;  %p1125_p5 = scmp.lt.s32.totalorder %s1119_s24, %s1119_s24 }
   0xd   :  { %p1126_p6 = por %p1125_p5, %p1124_p4 }
   0xf   :  { %p1127_p7 = pnand %p1126_p6, %p1120_p3 }
  0x11   :  { %1130 = shalt.err (!%p1127_p7)
}
  0x12   :  { %s1228_s25 = smov 128   ;;  %s1229_s26 = smov 8  }
  0x13   :  { %25 = dma.hbm_to_vmem [thread:$0]  %s1624_s0, 512, %s20_s16, [#allocation5], %s1228_s25, %s1228_s25, %s1229_s26  }
  0x14   :  { %s1230_s29 = smov [#allocation7]   ;;  %s1131_s7 = scalar_lea.hbm %s1625_s1, 9984 }
  0x15   :  { %s31_s30 = sshll.u32 %s1230_s29, 4  ;;  %p1132_p8 = scmp.ne.s32.totalorder %s1625_s1, %s1131_s7  ;;  %s32_s30 = int_to_ptr.vmem [resolvable:$true] %s31_s30 }
  0x16   :  { %p1135_p9 = scmp.lt.u32.totalorder %s1131_s7, %s1625_s1 }
  0x18   :  { %p1137_p10 = pnand %p1135_p9, %p1132_p8 }
  0x1a   :  { %1140 = shalt.err (!%p1137_p10)
}
  0x1b   :  { %s1141_s12 = scalar_lea.vmem %s32_s30, 9984  ;;  %p1146_p12 = scmp.lt.s32.totalorder %s32_s30, %s32_s30 }
  0x1c   :  { %p1142_p11 = scmp.ne.s32.totalorder %s32_s30, %s1141_s12  ;;  %p1147_p13 = scmp.lt.s32.totalorder %s1141_s12, %s1141_s12 }
  0x1e   :  { %p1148_p0 = por %p1147_p13, %p1146_p12 }
  0x20   :  { %p1149_p1 = pnand %p1148_p0, %p1142_p11 }
  0x22   :  { %1152 = shalt.err (!%p1149_p1)
}
  0x23   :  { %37 = dma.hbm_to_vmem [thread:$0]  %s1625_s1, 9984, %s32_s30, [#allocation8], %s1228_s25, %s1228_s25, %s1229_s26  }
  0x24   :  { %1219 = dma.done.wait [#allocation5], 512  }
  0x25   :  { %1220 = vsyncadd [#allocation5], 4294966784 }
  0x26   :  { %1221 = dma.done.wait [#allocation8], 9984  }
  0x27   :  { %1222 = vsyncadd [#allocation8], 4294957312  ;;  %v44_v0 = vld [vmem:[#allocation7] sm:$0xff]  ;;  %v45_v1 = vld [vmem:[#allocation7 + $0x8] sm:$0xff]  ;;  %s1231_s1 = smov 96   ;;  %v1232_v41 = vmov 0.0  }
  0x28   :  { %v46_v2 = vld [vmem:[#allocation7 + $0x10] sm:$0xff]  ;;  %v990_v3 = vpack.c.bf16 %v45_v1, %v44_v0  ;;  %v47_v4 = vld [vmem:[#allocation7 + $0x18] sm:$0xff]  ;;  %v48_v6 = vld [vmem:[#allocation7 + $0x20] sm:$0xff]  ;;  %295 = vst [vmem:[#allocation2 + $0x30] sm:$0xff] %v1232_v41  ;;  %vm291_vm0 = vcmask 785408   ;;  %s1233_s14 = smov 64  }
  0x29   :  { %v994_v5 = vpack.c.bf16 %v47_v4, %v46_v2  ;;  %v49_v7 = vld [vmem:[#allocation7 + $0x28] sm:$0xff]  ;;  %v61_v9 = vld [vmem:[#allocation4] sm:$0xff]  ;;  %v50_v10 = vld [vmem:[#allocation7 + $0x30] sm:$0xff]  ;;  %288 = vst [vmem:[#allocation2] sm:$0xff] %v1232_v41  ;;  %v1234_v53 = vmov 0.0|0.0   ;;  %vm311_vm1 = vcmask 261127  }
  0x2a   :  { %991 = vmatprep.subr.bf16.mxu1 %v990_v3  ;;  %v998_v8 = vpack.c.bf16 %v49_v7, %v48_v6  ;;  %v51_v11 = vld [vmem:[#allocation7 + $0x38] sm:$0xff]  ;;  %984 = vmatprep.mubr.f32.mxu1 %v61_v9  ;;  %v52_v13 = vld [vmem:[#allocation7 + $0x40] sm:$0xff]  ;;  %v53_v14 = vld [vmem:[#allocation7 + $0x48] sm:$0xff]  ;;  %289 = vst [vmem:[#allocation2 + $0x8] sm:$0xff] %v1232_v41  ;;  %vm362_vm2 = vcmask 261123   ;;  %s1235_s15 = smov 32  }
  0x2b   :  { %993 = vmatpush3.bf16.msra.mxu1 %v990_v3  ;;  %v1002_v12 = vpack.c.bf16 %v51_v11, %v50_v10  ;;  %v1006_v15 = vpack.c.bf16 %v53_v14, %v52_v13  ;;  %v54_v16 = vld [vmem:[#allocation7 + $0x50] sm:$0xff]  ;;  %v55_v17 = vld [vmem:[#allocation7 + $0x58] sm:$0xff]  ;;  %v56_v19 = vld [vmem:[#allocation7 + $0x60] sm:$0xff]  ;;  %290 = vst [vmem:[#allocation2 + $0x10] sm:$0xff] %v1232_v41  ;;  %1054 = vmatprep.subr.bf16.mxu0 %v1234_v53  ;;  %vm401_vm3 = vcmask 260096   ;;  %vm423_vm4 = vcmask 256000  }
  0x2c   :  { %995 = vmatprep.subr.bf16.mxu1 %v994_v5  ;;  %v1010_v18 = vpack.c.bf16 %v55_v17, %v54_v16  ;;  %v57_v20 = vld [vmem:[#allocation7 + $0x68] sm:$0xff]  ;;  %v58_v22 = vld [vmem:[#allocation7 + $0x70] sm:$0xff]  ;;  %v59_v23 = vld [vmem:[#allocation7 + $0x78] sm:$0xff]  ;;  %293 = vst [vmem:[#allocation2 + $0x20] sm:$0xff] %v1232_v41  ;;  %vm283_vm5 = vcmask 261120   ;;  %vm305_vm6 = vcmask 1046528  }
  0x2d   :  { %v1014_v21 = vpack.c.bf16 %v57_v20, %v56_v19  ;;  %v1018_v24 = vpack.c.bf16 %v59_v23, %v58_v22  ;;  %v62_v25 = vld [vmem:[#allocation4 + $0x8] sm:$0xff]  ;;  %v63_v26 = vld [vmem:[#allocation4 + $0x10] sm:$0xff]  ;;  %v64_v27 = vld [vmem:[#allocation4 + $0x18] sm:$0xff]  ;;  %294 = vst [vmem:[#allocation2 + $0x28] sm:$0xff] %v1232_v41  ;;  %vm356_vm7 = vcmask 1042432   ;;  %vm314_vm8 = vcmask 1045504  }
  0x2e   :  { %v882_v28 = vld [vmem:[#allocation7 + $0x80] ss:$0 sm:$0xff]  ;;  %297 = vst [vmem:[#allocation2 + $0x40] sm:$0xff] %v1232_v41  ;;  %298 = vst [vmem:[#allocation2 + $0x48] sm:$0xff] %v1232_v41  ;;  %v577_v50 = vld [vmem:[#allocation7 + $0x188] sm:$0xff]  ;;  %vm328_vm9 = vcmask 1044480  }
  0x2f   :  { %997 = vmatpush3.bf16.msra.mxu1 %v994_v5  ;;  %299 = vst [vmem:[#allocation2 + $0x50] sm:$0xff] %v1232_v41  ;;  %301 = vst [vmem:[#allocation2 + $0x60] sm:$0xff] %v1232_v41  ;;  %v578_v51 = vld [vmem:[#allocation7 + $0x190] sm:$0xff]  ;;  %v579_v52 = vld [vmem:[#allocation7 + $0x198] sm:$0xff]  ;;  %vm365_vm10 = vcmask 1041408   ;;  %vm342_vm11 = vcmask 1043456  }
  0x30   :  { %999 = vmatprep.subr.bf16.mxu1 %v998_v8  ;;  %302 = vst [vmem:[#allocation2 + $0x68] sm:$0xff] %v1232_v41  ;;  %303 = vst [vmem:[#allocation2 + $0x70] sm:$0xff] %v1232_v41  ;;  %v1055_v54 = vpack.c.bf16 %v578_v51, %v577_v50  ;;  %v580_v55 = vld [vmem:[#allocation7 + $0x1a0] sm:$0xff]  ;;  %v581_v57 = vld [vmem:[#allocation7 + $0x1a8] sm:$0xff]  ;;  %vm378_vm12 = vcmask 1040384   ;;  %vm407_vm13 = vcmask 521472  }
  0x31   :  { %296 = vst.msk [vmem:[#allocation2 + $0x38] sm:$0xff] %vm291_vm0, %v1232_v41  ;;  %292 = vst.msk [vmem:[#allocation2 + $0x18] sm:$0xff] %vm291_vm0, %v1232_v41  ;;  %v1058_v56 = vpack.c.bf16 %v580_v55, %v579_v52  ;;  %v582_v58 = vld [vmem:[#allocation7 + $0x1b0] sm:$0xff]  ;;  %v583_v60 = vld [vmem:[#allocation7 + $0x1b8] sm:$0xff]  ;;  %vm413_vm14 = vcmask 782848   ;;  %vm429_vm15 = vcmask 517376  }
  0x32   :  { %300 = vst.msk [vmem:[#allocation2 + $0x58] sm:$0xff] %vm291_vm0, %v1232_v41  ;;  %304 = vst.msk [vmem:[#allocation2 + $0x78] sm:$0xff] %vm291_vm0, %v1232_v41  ;;  %1056 = vmatpush1.bf16.msra.mxu0 %v1055_v54  ;;  %v1061_v59 = vpack.c.bf16 %v582_v58, %v581_v57  ;;  %v584_v61 = vld [vmem:[#allocation7 + $0x1c0] sm:$0xff]  ;;  %v561_v63 = vld [vmem:[#allocation7 + $0x108] sm:$0xff]  ;;  %s1237_s16 = smov [#allocation9]  }
  0x33   :  { %1001 = vmatpush3.bf16.msra.mxu1 %v998_v8  ;;  %1057 = vmatprep.subr.bf16.mxu0 %v1234_v53  ;;  %v1064_v62 = vpack.c.bf16 %v584_v61, %v583_v60  ;;  %v562_v0 = vld [vmem:[#allocation7 + $0x110] sm:$0xff]  ;;  %v585_v1 = vld [vmem:[#allocation7 + $0x1c8] sm:$0xff]  ;;  %v563_v9 = vld [vmem:[#allocation7 + $0x118] sm:$0xff]  ;;  %s843_s17 = sshll.u32 %s1237_s16, 4  ;;  %s844_s17 = int_to_ptr.vmem [resolvable:$true] %s843_s17 }
  0x34   :  { %1003 = vmatprep.subr.bf16.mxu1 %v1002_v12  ;;  %v1022_v2 = vpack.c.bf16 %v562_v0, %v561_v63  ;;  %v586_v3 = vld [vmem:[#allocation7 + $0x1d0] sm:$0xff]  ;;  %v545_v4 = vld [vmem:[#allocation7 + $0x88] sm:$0xff]  ;;  %v564_v10 = vld [vmem:[#allocation7 + $0x120] sm:$0xff]  ;;  %s1153_s18 = scalar_lea.vmem %s844_s17, 128  ;;  %p1158_p3 = scmp.lt.s32.totalorder %s844_s17, %s844_s17 }
  0x35   :  { %v546_v5 = vld [vmem:[#allocation7 + $0x90] sm:$0xff]  ;;  %v1067_v6 = vpack.c.bf16 %v586_v3, %v585_v1  ;;  %v587_v11 = vld [vmem:[#allocation7 + $0x1d8] sm:$0xff]  ;;  %v1026_v13 = vpack.c.bf16 %v564_v10, %v563_v9  ;;  %v588_v14 = vld [vmem:[#allocation7 + $0x1e0] sm:$0xff]  ;;  %p1154_p2 = scmp.ne.s32.totalorder %s844_s17, %s1153_s18  ;;  %p1159_p4 = scmp.lt.s32.totalorder %s1153_s18, %s1153_s18 }
  0x36   :  { %1059 = vmatpush1.bf16.msra.mxu0 %v1058_v56  ;;  %v1024_v7 = vpack.c.bf16 %v546_v5, %v545_v4  ;;  %v548_v16 = vld [vmem:[#allocation7 + $0xa0] sm:$0xff]  ;;  %v1070_v17 = vpack.c.bf16 %v588_v14, %v587_v11  ;;  %v566_v22 = vld [vmem:[#allocation7 + $0x130] sm:$0xff]  ;;  %v589_v23 = vld [vmem:[#allocation7 + $0x1e8] sm:$0xff] }
  0x37   :  { %1005 = vmatpush3.bf16.msra.mxu1 %v1002_v12  ;;  %1060 = vmatprep.subr.bf16.mxu0 %v1234_v53  ;;  %v569_v51 = vld [vmem:[#allocation7 + $0x148] sm:$0xff]  ;;  %v570_v52 = vld [vmem:[#allocation7 + $0x150] sm:$0xff]  ;;  %v572_v3 = vld [vmem:[#allocation7 + $0x160] sm:$0xff]  ;;  %p1160_p5 = por %p1159_p4, %p1158_p3 }
  0x38   :  { %1007 = vmatprep.subr.bf16.mxu1 %v1006_v15  ;;  %v593_v54 = vld [vmem:[#allocation7 + $0x208] sm:$0xff]  ;;  %v594_v57 = vld [vmem:[#allocation7 + $0x210] sm:$0xff]  ;;  %v1038_v63 = vpack.c.bf16 %v570_v52, %v569_v51  ;;  %v595_v4 = vld [vmem:[#allocation7 + $0x218] sm:$0xff] }
  0x39   :  { %v553_v58 = vld [vmem:[#allocation7 + $0xc8] sm:$0xff]  ;;  %v1079_v0 = vpack.c.bf16 %v594_v57, %v593_v54  ;;  %v602_v57 = vld [vmem:[#allocation7 + $0x250] sm:$0xff]  ;;  %p1161_p6 = pnand %p1160_p5, %p1154_p2 }
  0x3a   :  { %1062 = vmatpush1.bf16.msra.mxu0 %v1061_v59  ;;  %v554_v59 = vld [vmem:[#allocation7 + $0xd0] sm:$0xff]  ;;  %v601_v54 = vld [vmem:[#allocation7 + $0x248] sm:$0xff] }
  0x3b   :  { %1009 = vmatpush3.bf16.msra.mxu1 %v1006_v15  ;;  %1063 = vmatprep.subr.bf16.mxu0 %v1234_v53  ;;  %v547_v15 = vld [vmem:[#allocation7 + $0x98] sm:$0xff] }
  0x3c   :  { %1011 = vmatprep.subr.bf16.mxu1 %v1010_v18 }
  0x3e   :  { %1065 = vmatpush1.bf16.msra.mxu0 %v1064_v62 }
  0x3f   :  { %1013 = vmatpush3.bf16.msra.mxu1 %v1010_v18  ;;  %1066 = vmatprep.subr.bf16.mxu0 %v1234_v53  ;;  %v1028_v18 = vpack.c.bf16 %v548_v16, %v547_v15 }
  0x40   :  { %1015 = vmatprep.subr.bf16.mxu1 %v1014_v21 }
  0x42   :  { %1068 = vmatpush1.bf16.msra.mxu0 %v1067_v6  ;;  %v596_v6 = vld [vmem:[#allocation7 + $0x220] sm:$0xff] }
  0x43   :  { %1017 = vmatpush3.bf16.msra.mxu1 %v1014_v21  ;;  %1069 = vmatprep.subr.bf16.mxu0 %v1234_v53  ;;  %v565_v21 = vld [vmem:[#allocation7 + $0x128] sm:$0xff] }
  0x44   :  { %1019 = vmatprep.subr.bf16.mxu1 %v1018_v24 }
  0x46   :  { %1071 = vmatpush1.bf16.msra.mxu0 %v1070_v17  ;;  %v1082_v17 = vpack.c.bf16 %v596_v6, %v595_v4 }
  0x47   :  { %1021 = vmatpush3.bf16.msra.mxu1 %v1018_v24  ;;  %1072 = vmatprep.subr.bf16.mxu0 %v1234_v53 }
  0x48   :  { %1023 = vmatprep.subr.bf16.mxu1 %v1022_v2  ;;  %v571_v2 = vld [vmem:[#allocation7 + $0x158] sm:$0xff] }
  0x49   :  { %v1042_v11 = vpack.c.bf16 %v572_v3, %v571_v2 }
  0x4a   :  { %985 = vmatmul.mubr.f32.vlgmr.msra.gmra.mrb[0].mxu1 %v62_v25  ;;  %v1030_v25 = vpack.c.bf16 %v566_v22, %v565_v21  ;;  %v597_v21 = vld [vmem:[#allocation7 + $0x228] sm:$0xff] }
  0x4b   :  { %987 = vmatprep.mubr.f32.mxu1 %v63_v26  ;;  %1025 = vmatpush3.bf16.msra.mxu1 %v1024_v7  ;;  %v590_v26 = vld [vmem:[#allocation7 + $0x1f0] sm:$0xff]  ;;  %v555_v7 = vld [vmem:[#allocation7 + $0xd8] sm:$0xff] }
  0x4c   :  { %1027 = vmatprep.subr.bf16.mxu1 %v1026_v13 }
  0x4e   :  { %988 = vmatmul.mubr.f32.gmra.mrb[2].mxu1 %v64_v27  ;;  %v549_v27 = vld [vmem:[#allocation7 + $0xa8] sm:$0xff] }
  0x4f   :  { %1029 = vmatpush3.bf16.msra.mxu1 %v1028_v18 }
  0x50   :  { %1031 = vmatprep.subr.bf16.mxu1 %v1030_v25  ;;  %v598_v25 = vld [vmem:[#allocation7 + $0x230] sm:$0xff] }
 0x11d   :  { %v986_v29 = vpop.f32.mrb[0].mxu1 }
 0x11e   :  { %v135_v30 = vpop.f32.mrb[1].mxu1  ;;  %v141_v32 = vadd.f32 %v986_v29, %v882_v28 }
 0x11f   :  { %v136_v31 = vadd.f32 %v882_v28, %v135_v30  ;;  %v1073_v30 = vpack.c.bf16 %v590_v26, %v589_v23  ;;  %v557_v26 = vld [vmem:[#allocation7 + $0xe8] sm:$0xff] }
 0x120   :  { %v1299_v38 = vmax.f32 %v141_v32, 0.0 }
 0x121   :  { %v1295_v33 = vmax.f32 %v136_v31, 0.0  ;;  %v989_v34 = vpop.f32.mrb[2].mxu1  ;;  %1074 = vmatpush1.bf16.msra.mxu0 %v1073_v30 }
 0x122   :  { %v145_v35 = vpop.f32.mrb[3].mxu1  ;;  %v151_v36 = vadd.f32 %v989_v34, %v882_v28  ;;  %v567_v34 = vld [vmem:[#allocation7 + $0x138] sm:$0xff]  ;;  %1075 = vmatprep.subr.bf16.mxu0 %v1234_v53 }
 0x123   :  { %v146_v37 = vadd.f32 %v882_v28, %v145_v35  ;;  %162 = vrot.lane.b32.xlu0 %v1295_v33, %s1231_s1  ;;  %v550_v28 = vld [vmem:[#allocation7 + $0xb0] sm:$0xff]  ;;  %v568_v35 = vld [vmem:[#allocation7 + $0x140] sm:$0xff] }
 0x124   :  { %v1303_v40 = vmax.f32 %v151_v36, 0.0  ;;  %v1032_v31 = vpack.c.bf16 %v550_v28, %v549_v27  ;;  %v1034_v50 = vpack.c.bf16 %v568_v35, %v567_v34  ;;  %v558_v27 = vld [vmem:[#allocation7 + $0xf0] sm:$0xff]  ;;  %v575_v35 = vld [vmem:[#allocation7 + $0x178] sm:$0xff] }
 0x125   :  { %v1301_v39 = vmax.f32 %v146_v37, 0.0  ;;  %v591_v37 = vld [vmem:[#allocation7 + $0x1f8] sm:$0xff]  ;;  %v1048_v34 = vpack.c.bf16 %v558_v27, %v557_v26 }
 0x126   :  { %1033 = vmatpush3.bf16.msra.mxu1 %v1032_v31  ;;  %v1085_v31 = vpack.c.bf16 %v598_v25, %v597_v21 }
 0x127   :  { %166 = vrot.lane.b32.xlu1 %v1301_v39, %s1231_s1  ;;  %164 = vrot.lane.b32.xlu0 %v1299_v38, %s1231_s1 }
 0x128   :  { %1035 = vmatprep.subr.bf16.mxu1 %v1034_v50 }
 0x12b   :  { %168 = vrot.lane.b32.xlu1 %v1303_v40, %s1231_s1 }
 0x195   :  { %v163_v42 = vpop.permute.xlu0 %162 }
 0x196   :  { %v174_v43 = vmax.f32 %v1295_v33, %v163_v42 }
 0x198   :  { %182 = vrot.lane.b32.xlu0 %v174_v43, %s1233_s14 }
 0x199   :  { %v167_v44 = vpop.permute.xlu1 %166  ;;  %v165_v45 = vpop.permute.xlu0 %164 }
 0x19a   :  { %v1318_v46 = vmax.f32 %v1301_v39, %v167_v44  ;;  %v175_v47 = vmax.f32 %v1299_v38, %v165_v45  ;;  %v551_v44 = vld [vmem:[#allocation7 + $0xb8] sm:$0xff]  ;;  %v552_v45 = vld [vmem:[#allocation7 + $0xc0] sm:$0xff] }
 0x19b   :  { %v1036_v61 = vpack.c.bf16 %v552_v45, %v551_v44  ;;  %v559_v44 = vld [vmem:[#allocation7 + $0xf8] sm:$0xff]  ;;  %v560_v45 = vld [vmem:[#allocation7 + $0x100] sm:$0xff] }
 0x19c   :  { %186 = vrot.lane.b32.xlu0 %v1318_v46, %s1233_s14  ;;  %184 = vrot.lane.b32.xlu1 %v175_v47, %s1233_s14  ;;  %v1052_v51 = vpack.c.bf16 %v560_v45, %v559_v44 }
 0x19d   :  { %v169_v48 = vpop.permute.xlu1 %168  ;;  %1037 = vmatpush3.bf16.msra.mxu1 %v1036_v61 }
 0x19e   :  { %v1325_v49 = vmax.f32 %v1303_v40, %v169_v48  ;;  %1039 = vmatprep.subr.bf16.mxu1 %v1038_v63 }
 0x1a0   :  { %188 = vrot.lane.b32.xlu1 %v1325_v49, %s1233_s14 }
 0x20a   :  { %v183_v8 = vpop.permute.xlu0 %182 }
 0x20b   :  { %v1334_v12 = vmax.f32 %v174_v43, %v183_v8  ;;  %v592_v43 = vld [vmem:[#allocation7 + $0x200] sm:$0xff] }
 0x20c   :  { %v556_v8 = vld [vmem:[#allocation7 + $0xe0] sm:$0xff] }
 0x20d   :  { %v306_v20 = vrot.slane %v1334_v12, 1  ;;  %v357_v29 = vrot.slane %v1334_v12, 5  ;;  %v315_v62 = vrot.slane %v1334_v12, 2  ;;  %v329_v15 = vrot.slane %v1334_v12, 3 }
 0x20e   :  { %v185_v19 = vpop.permute.xlu1 %184  ;;  %v187_v41 = vpop.permute.xlu0 %186  ;;  %v1044_v18 = vpack.c.bf16 %v556_v8, %v555_v7  ;;  %v343_v30 = vrot.slane %v1334_v12, 4  ;;  %v379_v52 = vrot.slane %v1334_v12, 7 }
 0x20f   :  { %v1338_v24 = vmax.f32 %v175_v47, %v185_v19  ;;  %312 = vst.msk [vmem:[#allocation2] sm:$0x80] %vm311_vm1, %v306_v20  ;;  %v1368_v60 = vmax.f32 %v1318_v46, %v187_v41  ;;  %v1040_v46 = vpack.c.bf16 %v554_v59, %v553_v58  ;;  %v573_v19 = vld [vmem:[#allocation7 + $0x168] sm:$0xff]  ;;  %v366_v41 = vrot.slane %v1334_v12, 6  ;;  %v603_v59 = vld [vmem:[#allocation7 + $0x258] sm:$0xff] }
 0x210   :  { %363 = vst.msk [vmem:[#allocation2 + $0x8] sm:$0xf8] %vm362_vm2, %v357_v29  ;;  %v1091_v58 = vpack.c.bf16 %v602_v57, %v601_v54 }
 0x211   :  { %393 = vrot.lane.b32.xlu0 %v1338_v24, %s1231_s1  ;;  %v316_v32 = vrot.slane %v1338_v24, 2  ;;  %v330_v42 = vrot.slane %v1338_v24, 3  ;;  %v307_v47 = vrot.slane %v1338_v24, 1  ;;  %v358_v48 = vrot.slane %v1338_v24, 5  ;;  %1041 = vmatpush3.bf16.msra.mxu1 %v1040_v46 }
 0x212   :  { %v189_v36 = vpop.permute.xlu1 %188  ;;  %v367_v56 = vrot.slane %v1338_v24, 6  ;;  %v380_v5 = vrot.slane %v1338_v24, 7  ;;  %v437_v14 = vrot.slane %v1368_v60, 1  ;;  %v477_v16 = vrot.slane %v1368_v60, 5  ;;  %1043 = vmatprep.subr.bf16.mxu1 %v1042_v11 }
 0x213   :  { %403 = vrot.lane.b32.xlu1 %v316_v32, %s1235_s15  ;;  %v1361_v55 = vmax.f32 %v1325_v49, %v189_v36  ;;  %402 = vst.msk [vmem:[#allocation2 + $0x30] sm:$0x7f] %vm401_vm3, %v307_v47  ;;  %v1076_v49 = vpack.c.bf16 %v592_v43, %v591_v37  ;;  %v308_v1 = vsel %vm305_vm6, %v306_v20, %v307_v47  ;;  %v574_v20 = vld [vmem:[#allocation7 + $0x170] sm:$0xff]  ;;  %v344_v23 = vrot.slane %v1338_v24, 4  ;;  %v576_v36 = vld [vmem:[#allocation7 + $0x180] sm:$0xff]  ;;  %v599_v37 = vld [vmem:[#allocation7 + $0x238] sm:$0xff] }
 0x214   :  { %424 = vst.msk [vmem:[#allocation2 + $0x38] sm:$0x7] %vm423_vm4, %v358_v48  ;;  %v359_v9 = vsel %vm356_vm7, %v357_v29, %v358_v48  ;;  %v1046_v29 = vpack.c.bf16 %v574_v20, %v573_v19  ;;  %v600_v43 = vld [vmem:[#allocation7 + $0x240] sm:$0xff]  ;;  %v1050_v47 = vpack.c.bf16 %v576_v36, %v575_v35  ;;  %v317_v48 = vsel %vm314_vm8, %v315_v62, %v316_v32 }
 0x215   :  { %391 = vrot.lane.b32.xlu0 %v1334_v12, %s1231_s1  ;;  %1077 = vmatpush1.bf16.msra.mxu0 %v1076_v49  ;;  %313 = vst.msk [vmem:[#allocation2 + $0x20] sm:$0xff] %vm283_vm5, %v308_v1  ;;  %400 = vst.msk [vmem:[#allocation2 + $0x10] sm:$0xff] %vm283_vm5, %v308_v1  ;;  %v438_v10 = vrot.slane %v1361_v55, 1  ;;  %v478_v13 = vrot.slane %v1361_v55, 5  ;;  %v1088_v50 = vpack.c.bf16 %v600_v43, %v599_v37  ;;  %v604_v49 = vld [vmem:[#allocation7 + $0x260] sm:$0xff]  ;;  %v484_v46 = vrot.slane %v1368_v60, 6 }
 0x216   :  { %1078 = vmatprep.subr.bf16.mxu0 %v1234_v53  ;;  %364 = vst.msk [vmem:[#allocation2 + $0x28] sm:$0xff] %vm283_vm5, %v359_v9  ;;  %422 = vst.msk [vmem:[#allocation2 + $0x18] sm:$0xff] %vm283_vm5, %v359_v9  ;;  %1045 = vmatpush3.bf16.msra.mxu1 %v1044_v18  ;;  %v331_v32 = vsel %vm328_vm9, %v329_v15, %v330_v42  ;;  %v368_v61 = vsel %vm365_vm10, %v366_v41, %v367_v56  ;;  %v455_v1 = vrot.slane %v1368_v60, 3 }
 0x217   :  { %409 = vrot.lane.b32.xlu1 %v330_v42, %s1233_s14  ;;  %516 = vst.msk [vmem:[#allocation2 + $0x70] sm:$0x7f] %vm401_vm3, %v438_v10  ;;  %v439_v22 = vsel %vm305_vm6, %v437_v14, %v438_v10  ;;  %v479_v28 = vsel %vm356_vm7, %v477_v16, %v478_v13  ;;  %1047 = vmatprep.subr.bf16.mxu1 %v1046_v29  ;;  %v495_v2 = vrot.slane %v1368_v60, 7  ;;  %v466_v3 = vrot.slane %v1368_v60, 4 }
 0x218   :  { %534 = vst.msk [vmem:[#allocation2 + $0x78] sm:$0x7] %vm423_vm4, %v478_v13  ;;  %v1094_v42 = vpack.c.bf16 %v604_v49, %v603_v59  ;;  %v381_v63 = vsel %vm378_vm12, %v379_v52, %v380_v5  ;;  %v496_v7 = vrot.slane %v1361_v55, 7  ;;  %v467_v9 = vrot.slane %v1361_v55, 4 }
 0x219   :  { %425 = vrot.lane.b32.xlu0 %v367_v56, %s1235_s15  ;;  %1080 = vmatpush1.bf16.msra.mxu0 %v1079_v0  ;;  %442 = vst.msk [vmem:[#allocation2 + $0x40] sm:$0x80] %vm311_vm1, %v437_v14  ;;  %v445_v56 = vrot.slane %v1361_v55, 2  ;;  %v485_v0 = vrot.slane %v1361_v55, 6  ;;  %vm324_vm1 = vcmask 523526   ;;  %vm338_vm3 = vcmask 785925  }
 0x21a   :  { %1081 = vmatprep.subr.bf16.mxu0 %v1234_v53  ;;  %482 = vst.msk [vmem:[#allocation2 + $0x48] sm:$0xf8] %vm362_vm2, %v477_v16  ;;  %1049 = vmatpush3.bf16.msra.mxu1 %v1048_v34  ;;  %v497_v10 = vsel %vm378_vm12, %v495_v2, %v496_v7  ;;  %v468_v11 = vsel %vm342_vm11, %v466_v3, %v467_v9  ;;  %vm435_vm2 = vcmask 778752   ;;  %vm419_vm4 = vcmask 1044224  }
 0x21b   :  { %318 = vrot.lane.b32.xlu1 %v315_v62, %s1235_s15  ;;  %443 = vst.msk [vmem:[#allocation2 + $0x60] sm:$0xff] %vm283_vm5, %v439_v22  ;;  %515 = vst.msk [vmem:[#allocation2 + $0x50] sm:$0xff] %vm283_vm5, %v439_v22  ;;  %1051 = vmatprep.subr.bf16.mxu1 %v1050_v47  ;;  %v345_v62 = vsel %vm342_vm11, %v343_v30, %v344_v23  ;;  %v486_v6 = vsel %vm365_vm10, %v484_v46, %v485_v0  ;;  %vm352_vm6 = vcmask 1048324   ;;  %vm375_vm7 = vcmask 523522  }
 0x21c   :  { %483 = vst.msk [vmem:[#allocation2 + $0x68] sm:$0xff] %vm283_vm5, %v479_v28  ;;  %533 = vst.msk [vmem:[#allocation2 + $0x58] sm:$0xff] %vm283_vm5, %v479_v28  ;;  %vm354_vm10 = vcmask 1048320   ;;  %vm340_vm11 = vcmask 785920  }
 0x21d   :  { %431 = vrot.lane.b32.xlu0 %v380_v5, %s1233_s14  ;;  %1083 = vmatpush1.bf16.msra.mxu0 %v1082_v17  ;;  %v456_v5 = vrot.slane %v1361_v55, 3 }
 0x21e   :  { %1084 = vmatprep.subr.bf16.mxu0 %v1234_v53  ;;  %1053 = vmatpush3.bf16.msra.mxu1 %v1052_v51 }
 0x21f   :  { %332 = vrot.lane.b32.xlu1 %v329_v15, %s1233_s14  ;;  %v457_v8 = vsel %vm328_vm9, %v455_v1, %v456_v5  ;;  %vm388_vm9 = vcmask 785921  }
 0x221   :  { %415 = vrot.lane.b32.xlu0 %v344_v23, %s1231_s1  ;;  %1086 = vmatpush1.bf16.msra.mxu0 %v1085_v31 }
 0x222   :  { %1087 = vmatprep.subr.bf16.mxu0 %v1234_v53 }
 0x223   :  { %346 = vrot.lane.b32.xlu1 %v343_v30, %s1231_s1 }
 0x225   :  { %369 = vrot.lane.b32.xlu0 %v366_v41, %s1235_s15  ;;  %1089 = vmatpush1.bf16.msra.mxu0 %v1088_v50 }
 0x226   :  { %1090 = vmatprep.subr.bf16.mxu0 %v1234_v53 }
 0x227   :  { %320 = vrot.lane.b32.xlu1 %v317_v48, %s1235_s15 }
 0x229   :  { %382 = vrot.lane.b32.xlu0 %v379_v52, %s1233_s14  ;;  %1092 = vmatpush1.bf16.msra.mxu0 %v1091_v58 }
 0x22a   :  { %1093 = vmatprep.subr.bf16.mxu0 %v1234_v53  ;;  %v444_v53 = vrot.slane %v1368_v60, 2 }
 0x22b   :  { %334 = vrot.lane.b32.xlu1 %v331_v32, %s1233_s14 }
 0x22c   :  { %v446_v4 = vsel %vm314_vm8, %v444_v53, %v445_v56  ;;  %vm326_vm8 = vcmask 523520  }
 0x22d   :  { %371 = vrot.lane.b32.xlu0 %v368_v61, %s1235_s15  ;;  %1095 = vmatpush1.bf16.msra.mxu0 %v1094_v42 }
 0x22f   :  { %348 = vrot.lane.b32.xlu1 %v345_v62, %s1231_s1 }
 0x231   :  { %384 = vrot.lane.b32.xlu0 %v381_v63, %s1233_s14 }
 0x233   :  { %508 = vrot.lane.b32.xlu1 %v1361_v55, %s1231_s1 }
 0x235   :  { %506 = vrot.lane.b32.xlu0 %v1368_v60, %s1231_s1 }
 0x237   :  { %517 = vrot.lane.b32.xlu1 %v445_v56, %s1235_s15 }
 0x239   :  { %535 = vrot.lane.b32.xlu0 %v485_v0, %s1235_s15 }
 0x23b   :  { %447 = vrot.lane.b32.xlu1 %v444_v53, %s1235_s15 }
 0x23d   :  { %487 = vrot.lane.b32.xlu0 %v484_v46, %s1235_s15 }
 0x23f   :  { %458 = vrot.lane.b32.xlu1 %v455_v1, %s1233_s14 }
 0x241   :  { %498 = vrot.lane.b32.xlu0 %v495_v2, %s1233_s14 }
 0x243   :  { %469 = vrot.lane.b32.xlu1 %v466_v3, %s1231_s1 }
 0x245   :  { %449 = vrot.lane.b32.xlu0 %v446_v4, %s1235_s15 }
 0x247   :  { %489 = vrot.lane.b32.xlu1 %v486_v6, %s1235_s15 }
 0x249   :  { %460 = vrot.lane.b32.xlu0 %v457_v8, %s1233_s14 }
 0x24b   :  { %500 = vrot.lane.b32.xlu1 %v497_v10, %s1233_s14 }
 0x24d   :  { %471 = vrot.lane.b32.xlu0 %v468_v11, %s1231_s1 }
 0x24f   :  { %522 = vrot.lane.b32.xlu1 %v456_v5, %s1233_s14  ;;  %v1236_v5 = vmov 3  }
 0x251   :  { %540 = vrot.lane.b32.xlu0 %v496_v7, %s1233_s14 }
 0x253   :  { %527 = vrot.lane.b32.xlu1 %v467_v9, %s1231_s1 }
 0x255   :  { %222 = vrot.lane.b32.xlu0 %v1334_v12, %s1233_s14 }
 0x257   :  { %224 = vrot.lane.b32.xlu1 %v1338_v24, %s1233_s14 }
 0x259   :  { %226 = vrot.lane.b32.xlu0 %v1368_v60, %s1233_s14 }
 0x25b   :  { %228 = vrot.lane.b32.xlu1 %v1361_v55, %s1233_s14 }
 0x25d   :  { %206 = vrot.lane.b32.xlu0 %v1334_v12, %s1235_s15 }
 0x25f   :  { %208 = vrot.lane.b32.xlu1 %v1338_v24, %s1235_s15 }
 0x261   :  { %210 = vrot.lane.b32.xlu0 %v1368_v60, %s1235_s15 }
 0x263   :  { %212 = vrot.lane.b32.xlu1 %v1361_v55, %s1235_s15 }
 0x283   :  { %v394_v13 = vpop.permute.xlu0 %393 }
 0x285   :  { %v404_v14 = vpop.permute.xlu1 %403 }
 0x286   :  { %408 = vst.msk [vmem:[#allocation2 + $0x30] sm:$0x3f] %vm407_vm13, %v404_v14 }
 0x287   :  { %v392_v15 = vpop.permute.xlu0 %391 }
 0x289   :  { %v410_v16 = vpop.permute.xlu1 %409 }
 0x28a   :  { %414 = vst.msk [vmem:[#allocation2 + $0x30] sm:$0x1f] %vm413_vm14, %v410_v16 }
 0x28b   :  { %v426_v17 = vpop.permute.xlu0 %425 }
 0x28c   :  { %430 = vst.msk [vmem:[#allocation2 + $0x38] sm:$0x3] %vm429_vm15, %v426_v17 }
 0x28d   :  { %v319_v18 = vpop.permute.xlu1 %318 }
 0x28e   :  { %325 = vst.msk [vmem:[#allocation2] sm:$0xc0] %vm324_vm1, %v319_v18 }
 0x28f   :  { %v432_v19 = vpop.permute.xlu0 %431 }
 0x290   :  { %436 = vst.msk [vmem:[#allocation2 + $0x38] sm:$0x1] %vm435_vm2, %v432_v19 }
 0x291   :  { %v333_v20 = vpop.permute.xlu1 %332 }
 0x292   :  { %339 = vst.msk [vmem:[#allocation2] sm:$0xe0] %vm338_vm3, %v333_v20 }
 0x293   :  { %v416_v21 = vpop.permute.xlu0 %415 }
 0x294   :  { %420 = vst.msk [vmem:[#allocation2 + $0x30] sm:$0xf] %vm419_vm4, %v416_v21 }
 0x295   :  { %v347_v22 = vpop.permute.xlu1 %346 }
 0x296   :  { %353 = vst.msk [vmem:[#allocation2] sm:$0xf0] %vm352_vm6, %v347_v22 }
 0x297   :  { %v370_v23 = vpop.permute.xlu0 %369  ;;  %v613_v50 = vld [vmem:[#allocation2 + $0x38] sm:$0xff] }
 0x298   :  { %376 = vst.msk [vmem:[#allocation2 + $0x8] sm:$0xfc] %vm375_vm7, %v370_v23 }
 0x299   :  { %v321_v25 = vpop.permute.xlu1 %320 }
 0x29a   :  { %327 = vst.msk [vmem:[#allocation2 + $0x20] sm:$0xff] %vm326_vm8, %v321_v25  ;;  %406 = vst.msk [vmem:[#allocation2 + $0x10] sm:$0xff] %vm326_vm8, %v321_v25 }
 0x29b   :  { %v383_v26 = vpop.permute.xlu0 %382  ;;  %v612_v52 = vld [vmem:[#allocation2 + $0x30] sm:$0xff] }
 0x29c   :  { %389 = vst.msk [vmem:[#allocation2 + $0x8] sm:$0xfe] %vm388_vm9, %v383_v26 }
 0x29d   :  { %397 = vst.msk [vmem:[#allocation2 + $0x8] sm:$0xff] %vm354_vm10, %v392_v15  ;;  %v335_v27 = vpop.permute.xlu1 %334  ;;  %v606_v35 = vld [vmem:[#allocation2] sm:$0xff] }
 0x29e   :  { %341 = vst.msk [vmem:[#allocation2 + $0x20] sm:$0xff] %vm340_vm11, %v335_v27  ;;  %412 = vst.msk [vmem:[#allocation2 + $0x10] sm:$0xff] %vm340_vm11, %v335_v27 }
 0x29f   :  { %v372_v28 = vpop.permute.xlu0 %371 }
 0x2a0   :  { %377 = vst.msk [vmem:[#allocation2 + $0x28] sm:$0xff] %vm326_vm8, %v372_v28  ;;  %428 = vst.msk [vmem:[#allocation2 + $0x18] sm:$0xff] %vm326_vm8, %v372_v28 }
 0x2a1   :  { %v349_v29 = vpop.permute.xlu1 %348 }
 0x2a2   :  { %355 = vst.msk [vmem:[#allocation2 + $0x20] sm:$0xff] %vm354_vm10, %v349_v29  ;;  %418 = vst.msk [vmem:[#allocation2 + $0x10] sm:$0xff] %vm354_vm10, %v349_v29 }
 0x2a3   :  { %v385_v30 = vpop.permute.xlu0 %384 }
 0x2a4   :  { %390 = vst.msk [vmem:[#allocation2 + $0x28] sm:$0xff] %vm340_vm11, %v385_v30  ;;  %434 = vst.msk [vmem:[#allocation2 + $0x18] sm:$0xff] %vm340_vm11, %v385_v30  ;;  %v607_v31 = vld [vmem:[#allocation2 + $0x8] sm:$0xff] }
 0x2a5   :  { %398 = vst.msk [vmem:[#allocation2 + $0x28] sm:$0xff] %vm354_vm10, %v394_v13  ;;  %v509_v34 = vpop.permute.xlu1 %508  ;;  %702 = vmatprep.mubr.f32.mxu1 %v607_v31 }
 0x2a6   :  { %703 = vmatmul.mubr.f32.vlgmr.msra.gmra.mrb[4].mxu1 %v606_v35 }
 0x2a7   :  { %v507_v36 = vpop.permute.xlu0 %506 }
 0x2a9   :  { %v518_v37 = vpop.permute.xlu1 %517  ;;  %v608_v45 = vld [vmem:[#allocation2 + $0x10] sm:$0xff]  ;;  %v610_v48 = vld [vmem:[#allocation2 + $0x20] sm:$0xff] }
 0x2aa   :  { %521 = vst.msk [vmem:[#allocation2 + $0x70] sm:$0x3f] %vm407_vm13, %v518_v37 }
 0x2ab   :  { %v536_v41 = vpop.permute.xlu0 %535  ;;  %v609_v43 = vld [vmem:[#allocation2 + $0x18] sm:$0xff] }
 0x2ac   :  { %539 = vst.msk [vmem:[#allocation2 + $0x78] sm:$0x3] %vm429_vm15, %v536_v41  ;;  %884 = vmatprep.mubr.msk.f32.mxu0 %vm291_vm0, %v609_v43  ;;  %v611_v44 = vld [vmem:[#allocation2 + $0x28] sm:$0xff] }
 0x2ad   :  { %v448_v47 = vpop.permute.xlu1 %447  ;;  %707 = vmatprep.mubr.f32.mxu1 %v611_v44  ;;  %788 = vmatmul.mubr.f32.vlgmr.msra.gmra.mrb[0].mxu0 %v608_v45 }
 0x2ae   :  { %453 = vst.msk [vmem:[#allocation2 + $0x40] sm:$0xc0] %vm324_vm1, %v448_v47  ;;  %708 = vmatmul.mubr.f32.gmra.mrb[6].mxu1 %v610_v48  ;;  %885 = vmatprep.mubr.msk.f32.mxu0 %vm291_vm0, %v613_v50 }
 0x2af   :  { %v488_v51 = vpop.permute.xlu0 %487 }
 0x2b0   :  { %493 = vst.msk [vmem:[#allocation2 + $0x48] sm:$0xfc] %vm375_vm7, %v488_v51 }
 0x2b1   :  { %v459_v54 = vpop.permute.xlu1 %458  ;;  %793 = vmatmul.mubr.f32.gmra.mrb[2].mxu0 %v612_v52 }
 0x2b2   :  { %464 = vst.msk [vmem:[#allocation2 + $0x40] sm:$0xe0] %vm338_vm3, %v459_v54 }
 0x2b3   :  { %v499_v57 = vpop.permute.xlu0 %498 }
 0x2b4   :  { %504 = vst.msk [vmem:[#allocation2 + $0x48] sm:$0xfe] %vm388_vm9, %v499_v57  ;;  %vm200_vm9 = vcmp.eq.f32.partialorder %v1301_v39, %v1368_v60 }
 0x2b5   :  { %512 = vst.msk [vmem:[#allocation2 + $0x48] sm:$0xff] %vm354_vm10, %v507_v36  ;;  %v470_v32 = vpop.permute.xlu1 %469 }
 0x2b6   :  { %475 = vst.msk [vmem:[#allocation2 + $0x40] sm:$0xf0] %vm352_vm6, %v470_v32  ;;  %vm199_vm6 = vcmp.eq.f32.partialorder %v1299_v38, %v1338_v24 }
 0x2b7   :  { %v450_v58 = vpop.permute.xlu0 %449 }
 0x2b8   :  { %454 = vst.msk [vmem:[#allocation2 + $0x60] sm:$0xff] %vm326_vm8, %v450_v58  ;;  %520 = vst.msk [vmem:[#allocation2 + $0x50] sm:$0xff] %vm326_vm8, %v450_v58 }
 0x2b9   :  { %v490_v59 = vpop.permute.xlu1 %489 }
 0x2ba   :  { %494 = vst.msk [vmem:[#allocation2 + $0x68] sm:$0xff] %vm326_vm8, %v490_v59  ;;  %538 = vst.msk [vmem:[#allocation2 + $0x58] sm:$0xff] %vm326_vm8, %v490_v59 }
 0x2bb   :  { %v461_v49 = vpop.permute.xlu0 %460 }
 0x2bc   :  { %465 = vst.msk [vmem:[#allocation2 + $0x60] sm:$0xff] %vm340_vm11, %v461_v49  ;;  %525 = vst.msk [vmem:[#allocation2 + $0x50] sm:$0xff] %vm340_vm11, %v461_v49  ;;  %v615_v61 = vld [vmem:[#allocation2 + $0x48] sm:$0xff] }
 0x2bd   :  { %v501_v62 = vpop.permute.xlu1 %500  ;;  %712 = vmatprep.mubr.f32.mxu1 %v615_v61  ;;  %v614_v42 = vld [vmem:[#allocation2 + $0x40] sm:$0xff] }
 0x2be   :  { %505 = vst.msk [vmem:[#allocation2 + $0x68] sm:$0xff] %vm340_vm11, %v501_v62  ;;  %543 = vst.msk [vmem:[#allocation2 + $0x58] sm:$0xff] %vm340_vm11, %v501_v62  ;;  %713 = vmatmul.mubr.f32.gmra.mrb[8].mxu1 %v614_v42 }
 0x2bf   :  { %513 = vst.msk [vmem:[#allocation2 + $0x68] sm:$0xff] %vm354_vm10, %v509_v34  ;;  %v472_v63 = vpop.permute.xlu0 %471  ;;  %v883_v34 = vld [vmem:[#allocation7 + $0x268] ss:$0 sm:$0xff] }
 0x2c0   :  { %476 = vst.msk [vmem:[#allocation2 + $0x60] sm:$0xff] %vm354_vm10, %v472_v63  ;;  %530 = vst.msk [vmem:[#allocation2 + $0x50] sm:$0xff] %vm354_vm10, %v472_v63 }
 0x2c1   :  { %v523_v56 = vpop.permute.xlu1 %522 }
 0x2c2   :  { %526 = vst.msk [vmem:[#allocation2 + $0x70] sm:$0x1f] %vm413_vm14, %v523_v56 }
 0x2c3   :  { %v541_v0 = vpop.permute.xlu0 %540 }
 0x2c4   :  { %544 = vst.msk [vmem:[#allocation2 + $0x78] sm:$0x1] %vm435_vm2, %v541_v0 }
 0x2c5   :  { %v528_v53 = vpop.permute.xlu1 %527  ;;  %v617_v46 = vld [vmem:[#allocation2 + $0x58] sm:$0xff] }
 0x2c6   :  { %531 = vst.msk [vmem:[#allocation2 + $0x70] sm:$0xf] %vm419_vm4, %v528_v53  ;;  %886 = vmatprep.mubr.msk.f32.mxu0 %vm291_vm0, %v617_v46  ;;  %v619_v1 = vld [vmem:[#allocation2 + $0x68] sm:$0xff]  ;;  %v266_v46 = vlaneseq  ;;  %vm198_vm4 = vcmp.eq.f32.partialorder %v1295_v33, %v1334_v12 }
 0x2c7   :  { %717 = vmatprep.mubr.f32.mxu1 %v619_v1  ;;  %v223_v2 = vpop.permute.xlu0 %222  ;;  %v618_v3 = vld [vmem:[#allocation2 + $0x60] sm:$0xff]  ;;  %v616_v4 = vld [vmem:[#allocation2 + $0x50] sm:$0xff] }
 0x2c8   :  { %vm234_vm12 = vcmp.eq.f32.partialorder %v1295_v33, %v223_v2  ;;  %718 = vmatmul.mubr.f32.gmra.mrb[10].mxu1 %v618_v3  ;;  %798 = vmatmul.mubr.f32.gmra.mrb[4].mxu0 %v616_v4 }
 0x2c9   :  { %v238_v6 = vsel %vm234_vm12, 2, %v1236_v5  ;;  %v225_v7 = vpop.permute.xlu1 %224 }
 0x2ca   :  { %vm235_vm13 = vcmp.eq.f32.partialorder %v1299_v38, %v225_v7  ;;  %242 = vrot.lane.b32.xlu0 %v238_v6, %s1231_s1  ;;  %v267_v6 = vshrl.u32 %v266_v46, 7 }
 0x2cb   :  { %v239_v8 = vsel %vm235_vm13, 2, %v1236_v5  ;;  %v227_v9 = vpop.permute.xlu0 %226  ;;  %v621_v10 = vld [vmem:[#allocation2 + $0x78] sm:$0xff] }
 0x2cc   :  { %vm236_vm14 = vcmp.eq.f32.partialorder %v1301_v39, %v227_v9  ;;  %244 = vrot.lane.b32.xlu1 %v239_v8, %s1231_s1  ;;  %887 = vmatprep.mubr.msk.f32.mxu0 %vm291_vm0, %v621_v10  ;;  %v268_v7 = vadd.s32 8, %v267_v6  ;;  %v271_v8 = vand.u32 15, %v267_v6  ;;  %v269_v9 = vadd.s32 16, %v267_v6 }
 0x2cd   :  { %v240_v11 = vsel %vm236_vm14, 2, %v1236_v5  ;;  %v229_v13 = vpop.permute.xlu1 %228  ;;  %v620_v14 = vld [vmem:[#allocation2 + $0x70] sm:$0xff] }
 0x2ce   :  { %vm237_vm15 = vcmp.eq.f32.partialorder %v1303_v40, %v229_v13  ;;  %803 = vmatmul.mubr.f32.gmra.mrb[6].mxu0 %v620_v14  ;;  %246 = vrot.lane.b32.xlu0 %v240_v11, %s1231_s1  ;;  %v272_v10 = vand.u32 15, %v268_v7  ;;  %v270_v11 = vadd.s32 24, %v267_v6 }
 0x2cf   :  { %v241_v15 = vsel %vm237_vm15, 2, %v1236_v5  ;;  %v207_v16 = vpop.permute.xlu0 %206 }
 0x2d0   :  { %248 = vrot.lane.b32.xlu1 %v241_v15, %s1231_s1  ;;  %vm218_vm1 = vcmp.eq.f32.partialorder %v1295_v33, %v207_v16  ;;  %v275_v16 = vmul.u32 4, %v271_v8 }
 0x2d1   :  { %v209_v17 = vpop.permute.xlu1 %208 }
 0x2d2   :  { %vm219_vm0 = vcmp.eq.f32.partialorder %v1299_v38, %v209_v17  ;;  %v273_v17 = vand.u32 15, %v269_v9 }
 0x2d3   :  { %v211_v18 = vpop.permute.xlu0 %210 }
 0x2d4   :  { %vm220_vm2 = vcmp.eq.f32.partialorder %v1301_v39, %v211_v18 }
 0x2d5   :  { %v213_v19 = vpop.permute.xlu1 %212 }
 0x2d6   :  { %vm221_vm3 = vcmp.eq.f32.partialorder %v1303_v40, %v213_v19 }
 0x33c   :  { %v243_v20 = vpop.permute.xlu0 %242 }
 0x33d   :  { %v250_v21 = vsel %vm218_vm1, 1, %v243_v20 }
 0x33e   :  { %v245_v22 = vpop.permute.xlu1 %244  ;;  %254 = vrot.lane.b32.xlu0 %v250_v21, %s1231_s1  ;;  %v832_v21 = vand.u32 3, %v267_v6 }
 0x33f   :  { %v251_v23 = vsel %vm219_vm0, 1, %v245_v22 }
 0x340   :  { %256 = vrot.lane.b32.xlu1 %v251_v23, %s1231_s1  ;;  %v247_v25 = vpop.permute.xlu0 %246  ;;  %v276_v23 = vmul.u32 4, %v272_v10 }
 0x341   :  { %v252_v26 = vsel %vm220_vm2, 1, %v247_v25  ;;  %v274_v25 = vand.u32 15, %v270_v11 }
 0x342   :  { %v249_v27 = vpop.permute.xlu1 %248  ;;  %258 = vrot.lane.b32.xlu0 %v252_v26, %s1231_s1 }
 0x343   :  { %v253_v28 = vsel %vm221_vm3, 1, %v249_v27 }
 0x344   :  { %260 = vrot.lane.b32.xlu1 %v253_v28, %s1231_s1 }
 0x379   :  { %v940_v29 = vpop.f32.mrb[4].mxu1 }
 0x37a   :  { %v941_v30 = vpop.f32.mrb[5].mxu1 }
 0x37b   :  { %v942_v31 = vadd.f32 %v941_v30, %v940_v29  ;;  %v277_v30 = vmul.u32 4, %v273_v17 }
 0x37d   :  { %v705_v35 = vadd.f32 %v942_v31, %v883_v34 }
 0x380   :  { %v789_v36 = vpop.f32.mrb[0].mxu0 }
 0x381   :  { %v790_v37 = vadd.f32 %v789_v36, %v705_v35  ;;  %v943_v41 = vpop.f32.mrb[6].mxu1  ;;  %v791_v43 = vpop.f32.mrb[1].mxu0  ;;  %v278_v35 = vmul.u32 4, %v274_v25 }
 0x382   :  { %v944_v44 = vpop.f32.mrb[7].mxu1 }
 0x383   :  { %v808_v45 = vmax.f32 %v790_v37, 0.0  ;;  %v945_v47 = vadd.f32 %v944_v44, %v943_v41 }
 0x384   :  { %v794_v48 = vpop.f32.mrb[2].mxu0 }
 0x385   :  { %812 = vst.msk [vmem:[#allocation3] sm:$0xff] %vm283_vm5, %v808_v45  ;;  %v710_v50 = vadd.f32 %v945_v47, %v883_v34  ;;  %v796_v51 = vpop.f32.mrb[3].mxu0 }
 0x387   :  { %v795_v52 = vadd.f32 %v794_v48, %v710_v50 }
 0x389   :  { %v809_v54 = vmax.f32 %v795_v52, 0.0 }
 0x38b   :  { %813 = vst.msk [vmem:[#allocation3 + $0x8] sm:$0xff] %vm283_vm5, %v809_v54 }
 0x391   :  { %v946_v57 = vpop.f32.mrb[8].mxu1 }
 0x392   :  { %v947_v32 = vpop.f32.mrb[9].mxu1 }
 0x393   :  { %v948_v58 = vadd.f32 %v947_v32, %v946_v57 }
 0x395   :  { %v715_v59 = vadd.f32 %v948_v58, %v883_v34 }
 0x39b   :  { %v949_v49 = vpop.f32.mrb[10].mxu1  ;;  %v799_v61 = vpop.f32.mrb[4].mxu0 }
 0x39c   :  { %v800_v62 = vadd.f32 %v799_v61, %v715_v59  ;;  %v950_v42 = vpop.f32.mrb[11].mxu1  ;;  %v801_v63 = vpop.f32.mrb[5].mxu0 }
 0x39d   :  { %v951_v56 = vadd.f32 %v950_v42, %v949_v49 }
 0x39e   :  { %v810_v0 = vmax.f32 %v800_v62, 0.0 }
 0x39f   :  { %v720_v53 = vadd.f32 %v951_v56, %v883_v34  ;;  %v834_v34 = vmul.u32 4, %v832_v21 }
 0x3a0   :  { %814 = vst.msk [vmem:[#allocation3 + $0x10] sm:$0xff] %vm283_vm5, %v810_v0 }
 0x3a1   :  { %v804_v1 = vpop.f32.mrb[6].mxu0 }
 0x3a2   :  { %v805_v2 = vadd.f32 %v804_v1, %v720_v53  ;;  %v806_v3 = vpop.f32.mrb[7].mxu0 }
 0x3a4   :  { %v811_v4 = vmax.f32 %v805_v2, 0.0 }
 0x3a6   :  { %815 = vst.msk [vmem:[#allocation3 + $0x18] sm:$0xff] %vm283_vm5, %v811_v4 }
 0x3ad   :  { %v816_v13 = vld [vmem:[#allocation3] ss:$4 sm:$0xff]  ;;  %v818_v14 = vld [vmem:[#allocation3 + $0x1] ss:$4 sm:$0xff]  ;;  %v820_v15 = vld [vmem:[#allocation3 + $0x2] ss:$4 sm:$0xff] }
 0x3ae   :  { %v822_v18 = vld [vmem:[#allocation3 + $0x3] ss:$4 sm:$0xff]  ;;  %v823_v19 = vmax.f32 %v816_v13, %v818_v14 }
 0x3af   :  { %v824_v20 = vmax.f32 %v820_v15, %v822_v18 }
 0x3b0   :  { %v255_v22 = vpop.permute.xlu0 %254 }
 0x3b1   :  { %v262_v26 = vsel %vm198_vm4, 0, %v255_v22  ;;  %v825_v27 = vmax.f32 %v823_v19, %v824_v20 }
 0x3b2   :  { %v279_v28 = vadd.s32 %v275_v16, %v262_v26  ;;  %v257_v29 = vpop.permute.xlu1 %256 }
 0x3b3   :  { %v263_v31 = vsel %vm199_vm6, 0, %v257_v29  ;;  %833 = vst.msk [vmem:[#allocation9] sm:$0xff] %vm283_vm5, %v825_v27  ;;  %vm827_vm7 = vcmp.eq.f32.partialorder %v818_v14, %v825_v27  ;;  %vm828_vm8 = vcmp.eq.f32.partialorder %v820_v15, %v825_v27 }
 0x3b4   :  { %284 = vst.msk [vmem:[#allocation10] sm:$0xff] %vm283_vm5, %v279_v28  ;;  %v280_v33 = vadd.s32 %v276_v23, %v263_v31  ;;  %v259_v12 = vpop.permute.xlu0 %258 }
 0x3b5   :  { %1164 = shalt.err (!%p1161_p6)
}
 0x3b6   :  { %s1165_s21 = scalar_lea.hbm %s1626_s2, 128 }
 0x3b7   :  { %p1166_p7 = scmp.ne.s32.totalorder %s1626_s2, %s1165_s21  ;;  %p1169_p8 = scmp.lt.u32.totalorder %s1165_s21, %s1626_s2 }
 0x3b9   :  { %p1171_p9 = pnand %p1169_p8, %p1166_p7 }
 0x3bb   :  { %1174 = shalt.err (!%p1171_p9)
}
 0x3bc   :  { %846 = dma.vmem_to_hbm [thread:$0]  %s844_s17, 128, %s1626_s2, [#allocation6]   ;;  %v829_v38 = vsel %vm828_vm8, 2, %v1236_v5  ;;  %v264_v24 = vsel %vm200_vm9, 0, %v259_v12  ;;  %vm826_vm10 = vcmp.eq.f32.partialorder %v816_v13, %v825_v27  ;;  %285 = vst.msk [vmem:[#allocation10 + $0x8] sm:$0xff] %vm283_vm5, %v280_v33  ;;  %vm201_vm11 = vcmp.eq.f32.partialorder %v1303_v40, %v1361_v55  ;;  %v261_v41 = vpop.permute.xlu1 %260 }
 0x3bd   :  { %s1238_s30 = smov [#allocation10]   ;;  %v830_v36 = vsel %vm827_vm7, 1, %v829_v38  ;;  %v281_v37 = vadd.s32 %v277_v30, %v264_v24  ;;  %s1239_s2 = smov [#allocation12]   ;;  %v265_v5 = vsel %vm201_vm11, 0, %v261_v41 }
 0x3be   :  { %s852_s5 = sshll.u32 %s1238_s30, 4  ;;  %v831_v43 = vsel %vm826_vm10, 0, %v830_v36  ;;  %s865_s6 = sshll.u32 %s1239_s2, 4  ;;  %v282_v39 = vadd.s32 %v278_v35, %v265_v5  ;;  %s853_s5 = int_to_ptr.vmem [resolvable:$true] %s852_s5  ;;  %s866_s6 = int_to_ptr.vmem [resolvable:$true] %s865_s6 }
 0x3bf   :  { %v835_v44 = vadd.s32 %v834_v34, %v831_v43  ;;  %286 = vst.msk [vmem:[#allocation10 + $0x10] sm:$0xff] %vm283_vm5, %v281_v37  ;;  %s1175_s7 = scalar_lea.vmem %s853_s5, 512  ;;  %p1180_p11 = scmp.lt.s32.totalorder %s853_s5, %s853_s5 }
 0x3c0   :  { %287 = vst.msk [vmem:[#allocation10 + $0x18] sm:$0xff] %vm283_vm5, %v282_v39  ;;  %p1176_p10 = scmp.ne.s32.totalorder %s853_s5, %s1175_s7  ;;  %p1181_p12 = scmp.lt.s32.totalorder %s1175_s7, %s1175_s7 }
 0x3c1   :  { %836 = vst.msk [vmem:[#allocation12] sm:$0xff] %vm283_vm5, %v835_v44 }
 0x3c2   :  { %p1182_p13 = por %p1181_p12, %p1180_p11 }
 0x3c4   :  { %p1183_p0 = pnand %p1182_p13, %p1176_p10 }
 0x3c6   :  { %1186 = shalt.err (!%p1183_p0)
}
 0x3c7   :  { %s1187_s10 = scalar_lea.hbm %s1627_s3, 512 }
 0x3c8   :  { %p1188_p1 = scmp.ne.s32.totalorder %s1627_s3, %s1187_s10  ;;  %p1191_p2 = scmp.lt.u32.totalorder %s1187_s10, %s1627_s3 }
 0x3ca   :  { %p1193_p3 = pnand %p1191_p2, %p1188_p1 }
 0x3cc   :  { %1196 = shalt.err (!%p1193_p3)
}
 0x3cd   :  { %858 = dma.vmem_to_hbm [thread:$0]  %s853_s5, 512, %s1627_s3, [#allocation11], %s1228_s25, %s1228_s25, %s1229_s26  }
 0x3ce   :  { %s1197_s15 = scalar_lea.vmem %s866_s6, 128  ;;  %p1202_p5 = scmp.lt.s32.totalorder %s866_s6, %s866_s6 }
 0x3cf   :  { %p1198_p4 = scmp.ne.s32.totalorder %s866_s6, %s1197_s15  ;;  %p1203_p6 = scmp.lt.s32.totalorder %s1197_s15, %s1197_s15 }
 0x3d1   :  { %p1204_p7 = por %p1203_p6, %p1202_p5 }
 0x3d3   :  { %p1205_p8 = pnand %p1204_p7, %p1198_p4 }
 0x3d5   :  { %1208 = shalt.err (!%p1205_p8)
}
 0x3d6   :  { %s1209_s18 = scalar_lea.hbm %s1628_s4, 128 }
 0x3d7   :  { %p1210_p9 = scmp.ne.s32.totalorder %s1628_s4, %s1209_s18  ;;  %p1213_p10 = scmp.lt.u32.totalorder %s1209_s18, %s1628_s4 }
 0x3d9   :  { %p1215_p11 = pnand %p1213_p10, %p1210_p9 }
 0x3db   :  { %1218 = shalt.err (!%p1215_p11)
}
 0x3dc   :  { %868 = dma.vmem_to_hbm [thread:$0]  %s866_s6, 128, %s1628_s4, [#allocation11]  }
 0x3dd   :  { %1223 = dma.done.wait [#allocation6], 128  }
 0x3de   :  { %1224 = vsyncadd [#allocation6], 4294967168 }
 0x3df   :  { %1225 = dma.done.wait [#allocation11], 640  }
 0x3e0   :  { %1226 = vsyncadd [#allocation11], 4294966656 }
 0x3e1   :  { %878 = vsyncpa [#allocation5], 1 }
 0x3e2   :  { %879 = vsyncpa [#allocation8], 1 }
 0x3e3   :  { %880 = vsyncpa [#allocation6], 1 }
 0x3e4   :  { %881 = vsyncpa [#allocation11], 1 }

</bundles_post_ra>
